<compile_context>
chip_gen: v5e
topology: v5e:2x2
jax: 0.10.0
libtpu: 0.0.40
codegen_flags: <defaults>
</compile_context>

<pallas_src>
import functools

import jax
import jax.numpy as jnp
from jax.experimental import pallas as pl
from jax.experimental.pallas import tpu as pltpu


# ---------------- Pallas kernel ----------------

def _moe_ffn_kernel(x_ref, w1r_ref, g_ref, w2_ref, out_ref, acc_ref,
                    *, eblk, hidden):
    """One grid step processes `eblk` experts for one batch tile.

    x_ref   : (TB, D)        batch tile (bf16/f32), resident across expert blocks
    w1r_ref : (D, EBLK*H)    W1 block, pre-transposed so N is lane-dense
    g_ref   : (1, TB, EBLK)  compact softmax gate for this (batch, expert) block, f32
    w2_ref  : (EBLK, H, D)   W2 block
    out_ref : (TB, D)        output tile (written once, at the last expert block)
    acc_ref : (TB, D) f32    VMEM accumulator scratch
    """
    eb = pl.program_id(1)

    @pl.when(eb == 0)
    def _():
        acc_ref[...] = jnp.zeros_like(acc_ref)

    x = x_ref[...]                                            # (TB, D)

    # First matmul for all EBLK experts in one lane-dense MXU pass; f32 accum.
    h = jnp.dot(x, w1r_ref[...], preferred_element_type=jnp.float32)
    h = jnp.maximum(h, 0.0)                                   # act1 = ReLU

    gate = g_ref[0]                                           # (TB, EBLK) f32
    w2_dtype = w2_ref.dtype

    # Second matmul + ReLU per expert.  The non-negative softmax gate is folded
    # into the activations before the matmul (g * relu(z) == relu(g * z)) with
    # a per-expert (TB, 1) lane-broadcast -- no HBM-expanded gate tensor.
    # Accumulation goes straight into the VMEM scratch every iteration so the
    # unroll never holds a (TB, D) f32 accumulator live across all experts.
    for e in range(eblk):
        he = h[:, e * hidden:(e + 1) * hidden]                # (TB, H) f32
        ge = gate[:, e:e + 1]                                 # (TB, 1) f32
        hge = (he * ge).astype(w2_dtype)                      # gate fold (f32 mul)
        ye = jnp.dot(hge, w2_ref[e], preferred_element_type=jnp.float32)
        acc_ref[...] += jnp.maximum(ye, 0.0)                  # act2 = ReLU

    @pl.when(eb == pl.num_programs(1) - 1)
    def _():
        out_ref[...] = acc_ref[...].astype(out_ref.dtype)


# ---------------- wrapper ----------------

def _pick_expert_block(num_experts, hidden, lane_target):
    """Largest expert-block size with EBLK*H ~ lane_target and EBLK | E."""
    eblk = max(1, min(num_experts, lane_target // max(hidden, 1)))
    while num_experts % eblk:
        eblk -= 1
    return eblk


def _vmem_limit_bytes(tb, d, eblk, hidden, compute_itemsize, out_itemsize):
    """Rough double-buffered VMEM budget for the chosen tiles (+ headroom)."""
    streamed = (2 * tb * d * compute_itemsize                 # x
                + 2 * d * eblk * hidden * compute_itemsize    # W1 block
                + 2 * eblk * hidden * d * compute_itemsize    # W2 block
                + 2 * tb * eblk * 4                           # gate (f32)
                + 2 * tb * d * out_itemsize)                  # out
    resident = tb * d * 4                                     # f32 accumulator
    est = streamed + resident
    return int(min(max(2 * est + (8 << 20), 32 << 20), 100 << 20))


def moe_block_einsum(x, w_route, w1, w2, k, *, return_route=False,
                     compute_dtype=jnp.bfloat16, lane_target=512,
                     batch_tile=256, weight_buffers=None):
    """x: (B, D); w_route: (E, D); w1: (E, D, H); w2: (E, H, D)."""
    B, D = x.shape
    E, _, H = w1.shape
    assert w2.shape == (E, H, D)
    assert w_route.shape == (E, D)

    # --- router: logits / top-k / softmax / scatter (tiny glue, left to XLA) ---
    logits = jnp.dot(x.astype(jnp.float32), w_route.T.astype(jnp.float32))
    topv, topi = jax.lax.top_k(logits, k)                     # (B, K)
    topw = jax.nn.softmax(topv, axis=-1)                      # (B, K)
    full_w = jnp.zeros((B, E), jnp.float32).at[
        jnp.arange(B)[:, None], topi].set(topw)               # (B, E), 0 elsewhere

    # --- batch tiling: weights are re-streamed once per batch tile, so use as
    #     few / as large tiles as possible; pad B so any batch size works. ---
    if B <= batch_tile:
        tb, pad_b = B, 0
    else:
        assert batch_tile % 8 == 0
        tb = batch_tile
        pad_b = (-B) % tb
    Bp = B + pad_b
    n_btile = Bp // tb

    # --- expert blocking: EBLK*H lanes per first-matmul MXU pass ---
    eblk = _pick_expert_block(E, H, lane_target)
    n_eblk = E // eblk

    # --- one-time layout prep (done by XLA) ---
    x_c = x.astype(compute_dtype)
    if pad_b:
        x_c = jnp.pad(x_c, ((0, pad_b), (0, 0)))
        full_w = jnp.pad(full_w, ((0, pad_b), (0, 0)))
    w1_r = jnp.transpose(w1, (1, 0, 2)).reshape(D, E * H).astype(compute_dtype)
    w2_c = w2.astype(compute_dtype)
    # Compact gate laid out (n_eblk, Bp, eblk): each grid step streams a legal
    # (1, tb, eblk) block.  No H-fold jnp.repeat / expanded HBM gate tensor.
    gate_r = full_w.reshape(Bp, n_eblk, eblk).transpose(1, 0, 2)

    kernel = functools.partial(_moe_ffn_kernel, eblk=eblk, hidden=H)

    def _wspec(shape, index_map):
        if weight_buffers is None:
            return pl.BlockSpec(shape, index_map)
        # Deeper weight pipelining (e.g. 3 on v5e if weight DMA is exposed).
        return pl.BlockSpec(shape, index_map,
                            pipeline_mode=pl.Buffered(weight_buffers))

    grid_spec = pltpu.PrefetchScalarGridSpec(
        num_scalar_prefetch=0,
        grid=(n_btile, n_eblk),
        in_specs=[
            pl.BlockSpec((tb, D), lambda bt, eb: (bt, 0)),            # x
            _wspec((D, eblk * H), lambda bt, eb: (0, eb)),            # W1 (lane-dense)
            pl.BlockSpec((1, tb, eblk), lambda bt, eb: (eb, bt, 0)),  # gate (compact)
            _wspec((eblk, H, D), lambda bt, eb: (eb, 0, 0)),          # W2 block
        ],
        out_specs=pl.BlockSpec((tb, D), lambda bt, eb: (bt, 0)),
        scratch_shapes=[pltpu.VMEM((tb, D), jnp.float32)],
    )

    out = pl.pallas_call(
        kernel,
        out_shape=jax.ShapeDtypeStruct((Bp, D), x.dtype),
        grid_spec=grid_spec,
        compiler_params=pltpu.CompilerParams(
            dimension_semantics=("parallel", "arbitrary"),
            vmem_limit_bytes=_vmem_limit_bytes(
                tb, D, eblk, H,
                jnp.dtype(compute_dtype).itemsize,
                jnp.dtype(x.dtype).itemsize)),
    )(x_c, w1_r, gate_r, w2_c)

    if pad_b:
        out = out[:B]
    if return_route:
        return out, topi
    return out


# ---------------- pure-JAX reference (for correctness check) ----------------

def moe_block_einsum_ref(x, w_route, w1, w2, k):
    logits = x @ w_route.T
    topv, topi = jax.lax.top_k(logits, k)
    topw = jax.nn.softmax(topv, axis=-1)
    h = jnp.maximum(jnp.einsum('bd,edh->ebh', x, w1), 0.0)
    y = jnp.maximum(jnp.einsum('ebh,ehd->ebd', h, w2), 0.0)
    y = jnp.transpose(y, (1, 0, 2))                                  # (B, E, D)
    topk_y = jnp.take_along_axis(y, topi[..., None], axis=1)         # (B, K, D)
    return jnp.einsum('bkd,bk->bd', topk_y, topw)


if __name__ == "__main__":
    # Module-consistent small shapes: d_block=32, moe_ratio=0.25 -> hidden=8,
    # num_experts=32, k=4, batch=8.  NOTE: correctness-only shapes; do NOT
    # tune/benchmark here (32-lane output blocks force masked stores).  Tune
    # at production shapes with D, H multiples of 128 and B >= 128.
    B, D, E, K = 8, 32, 32, 4
    H = int(D * 0.25)

    key = jax.random.PRNGKey(0)
    kr, k1, k2, kx, kx2 = jax.random.split(key, 5)

    # deterministic init mirroring init_rsqrt_uniform_:
    #   route_linear.weight ~ U(-D^-0.5, D^-0.5), shape (E, D)
    #   weights1 ~ U(-H^-0.5, H^-0.5), shape (E, D, H)
    #   weights2 ~ U(-D^-0.5, D^-0.5), shape (E, H, D)
    w_route = jax.random.uniform(kr, (E, D), jnp.float32,
                                 minval=-D ** -0.5, maxval=D ** -0.5)
    w1 = jax.random.uniform(k1, (E, D, H), jnp.float32,
                            minval=-H ** -0.5, maxval=H ** -0.5)
    w2 = jax.random.uniform(k2, (E, H, D), jnp.float32,
                            minval=-D ** -0.5, maxval=D ** -0.5)
    x = jax.random.normal(kx, (B, D), jnp.float32)

    ref = moe_block_einsum_ref(x, w_route, w1, w2, K)

    # 1) f32 streaming: exact-path check against the reference.
    out_f32, topi = moe_block_einsum(x, w_route, w1, w2, K, return_route=True,
                                     compute_dtype=jnp.float32)
    out_f32 = jax.block_until_ready(out_f32)
    assert out_f32.shape == (B, D) and topi.shape == (B, K)
    assert jnp.allclose(out_f32, ref, atol=1e-4, rtol=1e-4), "f32 mismatch vs reference"

    # 2) default bf16 streaming (f32 accumulation): looser tolerance.
    out_bf16 = jax.block_until_ready(moe_block_einsum(x, w_route, w1, w2, K))
    assert out_bf16.shape == (B, D)
    assert jnp.allclose(out_bf16, ref, atol=5e-2, rtol=5e-2), "bf16 mismatch vs reference"

    # 3) batch-padding / multi-tile path (B not a multiple of the batch tile).
    B2 = 20
    x2 = jax.random.normal(kx2, (B2, D), jnp.float32)
    out_pad = jax.block_until_ready(
        moe_block_einsum(x2, w_route, w1, w2, K,
                         compute_dtype=jnp.float32, batch_tile=8))
    ref2 = moe_block_einsum_ref(x2, w_route, w1, w2, K)
    assert out_pad.shape == (B2, D)
    assert jnp.allclose(out_pad, ref2, atol=1e-4, rtol=1e-4), "padded-batch mismatch"

    print("KERNEL_OK")
</pallas_src>

<mosaic_0001>
module attributes {stable_mosaic.version = 11 : i64} {
  func.func @_moe_ffn_kernel(%arg0: i32, %arg1: i32, %arg2: memref<8x32xf32, #tpu.memory_space<vmem>>, %arg3: memref<32x256xf32, #tpu.memory_space<vmem>>, %arg4: memref<1x8x32xf32, #tpu.memory_space<vmem>>, %arg5: memref<32x8x32xf32, #tpu.memory_space<vmem>>, %arg6: memref<8x32xf32, #tpu.memory_space<vmem>>, %arg7: memref<8x32xf32, #tpu.memory_space<vmem>>) attributes {dimension_semantics = [#tpu.dimension_semantics<parallel>, #tpu.dimension_semantics<arbitrary>], iteration_bounds = array<i64: 1, 1>, scalar_prefetch = 0 : i64, scratch_operands = 1 : i64, tpu.core_type = #tpu.core_type<tc>, window_params = [{transform_indices = @transform_0, window_bounds = array<i64: 8, 32>}, {transform_indices = @transform_1, window_bounds = array<i64: 32, 256>}, {transform_indices = @transform_2, window_bounds = array<i64: 1, 8, 32>}, {transform_indices = @transform_3, window_bounds = array<i64: 32, 8, 32>}, {transform_indices = @transform_4, window_bounds = array<i64: 8, 32>}]} {
    %c0_i32 = arith.constant 0 : i32
    %0 = arith.cmpi eq, %arg1, %c0_i32 : i32
    %1 = arith.extui %0 : i1 to i32
    %c0_i32_0 = arith.constant 0 : i32
    %2 = arith.cmpi ne, %1, %c0_i32_0 : i32
    scf.if %2 {
      %cst_267 = arith.constant 0.000000e+00 : f32
      %397 = vector.broadcast %cst_267 : f32 to vector<8x32xf32>
      %c0_268 = arith.constant 0 : index
      %c0_269 = arith.constant 0 : index
      %398 = vector.load %arg7[%c0_268, %c0_269] : memref<8x32xf32, #tpu.memory_space<vmem>>, vector<8x32xf32>
      tpu.vector_store %arg7[%c0_268, %c0_269], %397 {strides = array<i32>} : memref<8x32xf32, #tpu.memory_space<vmem>>, vector<8x32xf32>,
    } else {
    }
    %c0 = arith.constant 0 : index
    %c0_1 = arith.constant 0 : index
    %3 = vector.load %arg2[%c0, %c0_1] : memref<8x32xf32, #tpu.memory_space<vmem>>, vector<8x32xf32>
    %c0_2 = arith.constant 0 : index
    %c0_3 = arith.constant 0 : index
    %4 = vector.load %arg3[%c0_2, %c0_3] : memref<32x256xf32, #tpu.memory_space<vmem>>, vector<32x256xf32>
    %cst = arith.constant dense<0.000000e+00> : vector<8x256xf32>
    %5 = tpu.matmul %3, %4, %cst {dimension_numbers = #tpu.dot_dimension_numbers<[1], [0], [0], [1], [0, 0, 1, 1], [], []>} : vector<8x32xf32>, vector<32x256xf32>, vector<8x256xf32> -> vector<8x256xf32>
    %cst_4 = arith.constant 0.000000e+00 : f32
    %6 = vector.broadcast %cst_4 : f32 to vector<8x256xf32>
    %7 = arith.maximumf %5, %6 : vector<8x256xf32>
    %c0_5 = arith.constant 0 : index
    %c0_6 = arith.constant 0 : index
    %c0_7 = arith.constant 0 : index
    %8 = vector.load %arg4[%c0_5, %c0_6, %c0_7] : memref<1x8x32xf32, #tpu.memory_space<vmem>>, vector<1x8x32xf32>
    %9 = vector.shape_cast %8 : vector<1x8x32xf32> to vector<8x32xf32>
    %10 = vector.extract_strided_slice %7 {offsets = [0, 0], sizes = [8, 8], strides = [1, 1]} : vector<8x256xf32> to vector<8x8xf32>
    %11 = vector.extract_strided_slice %9 {offsets = [0, 0], sizes = [8, 1], strides = [1, 1]} : vector<8x32xf32> to vector<8x1xf32>
    %12 = vector.broadcast %11 : vector<8x1xf32> to vector<8x8xf32>
    %13 = arith.mulf %10, %12 : vector<8x8xf32>
    %c0_8 = arith.constant 0 : index
    %c0_9 = arith.constant 0 : index
    %c0_10 = arith.constant 0 : index
    %14 = vector.load %arg5[%c0_8, %c0_9, %c0_10] : memref<32x8x32xf32, #tpu.memory_space<vmem>>, vector<1x8x32xf32>
    %15 = vector.shape_cast %14 : vector<1x8x32xf32> to vector<8x32xf32>
    %cst_11 = arith.constant dense<0.000000e+00> : vector<8x32xf32>
    %16 = tpu.matmul %13, %15, %cst_11 {dimension_numbers = #tpu.dot_dimension_numbers<[1], [0], [0], [1], [0, 0, 1, 1], [], []>} : vector<8x8xf32>, vector<8x32xf32>, vector<8x32xf32> -> vector<8x32xf32>
    %c0_12 = arith.constant 0 : index
    %c0_13 = arith.constant 0 : index
    %17 = vector.load %arg7[%c0_12, %c0_13] : memref<8x32xf32, #tpu.memory_space<vmem>>, vector<8x32xf32>
    %cst_14 = arith.constant 0.000000e+00 : f32
    %18 = vector.broadcast %cst_14 : f32 to vector<8x32xf32>
    %19 = arith.maximumf %16, %18 : vector<8x32xf32>
    %20 = arith.addf %17, %19 : vector<8x32xf32>
    %c0_15 = arith.constant 0 : index
    %c0_16 = arith.constant 0 : index
    %21 = vector.load %arg7[%c0_15, %c0_16] : memref<8x32xf32, #tpu.memory_space<vmem>>, vector<8x32xf32>
    tpu.vector_store %arg7[%c0_15, %c0_16], %20 {strides = array<i32>} : memref<8x32xf32, #tpu.memory_space<vmem>>, vector<8x32xf32>,
    %22 = vector.extract_strided_slice %7 {offsets = [0, 8], sizes = [8, 8], strides = [1, 1]} : vector<8x256xf32> to vector<8x8xf32>
    %23 = vector.extract_strided_slice %9 {offsets = [0, 1], sizes = [8, 1], strides = [1, 1]} : vector<8x32xf32> to vector<8x1xf32>
    %24 = vector.broadcast %23 : vector<8x1xf32> to vector<8x8xf32>
    %25 = arith.mulf %22, %24 : vector<8x8xf32>
    %c1 = arith.constant 1 : index
    %c0_17 = arith.constant 0 : index
    %c0_18 = arith.constant 0 : index
    %26 = vector.load %arg5[%c1, %c0_17, %c0_18] : memref<32x8x32xf32, #tpu.memory_space<vmem>>, vector<1x8x32xf32>
    %27 = vector.shape_cast %26 : vector<1x8x32xf32> to vector<8x32xf32>
    %cst_19 = arith.constant dense<0.000000e+00> : vector<8x32xf32>
    %28 = tpu.matmul %25, %27, %cst_19 {dimension_numbers = #tpu.dot_dimension_numbers<[1], [0], [0], [1], [0, 0, 1, 1], [], []>} : vector<8x8xf32>, vector<8x32xf32>, vector<8x32xf32> -> vector<8x32xf32>
    %c0_20 = arith.constant 0 : index
    %c0_21 = arith.constant 0 : index
    %29 = vector.load %arg7[%c0_20, %c0_21] : memref<8x32xf32, #tpu.memory_space<vmem>>, vector<8x32xf32>
    %cst_22 = arith.constant 0.000000e+00 : f32
    %30 = vector.broadcast %cst_22 : f32 to vector<8x32xf32>
    %31 = arith.maximumf %28, %30 : vector<8x32xf32>
    %32 = arith.addf %29, %31 : vector<8x32xf32>
    %c0_23 = arith.constant 0 : index
    %c0_24 = arith.constant 0 : index
    %33 = vector.load %arg7[%c0_23, %c0_24] : memref<8x32xf32, #tpu.memory_space<vmem>>, vector<8x32xf32>
    tpu.vector_store %arg7[%c0_23, %c0_24], %32 {strides = array<i32>} : memref<8x32xf32, #tpu.memory_space<vmem>>, vector<8x32xf32>,
    %34 = vector.extract_strided_slice %7 {offsets = [0, 16], sizes = [8, 8], strides = [1, 1]} : vector<8x256xf32> to vector<8x8xf32>
    %35 = vector.extract_strided_slice %9 {offsets = [0, 2], sizes = [8, 1], strides = [1, 1]} : vector<8x32xf32> to vector<8x1xf32>
    %36 = vector.broadcast %35 : vector<8x1xf32> to vector<8x8xf32>
    %37 = arith.mulf %34, %36 : vector<8x8xf32>
    %c2 = arith.constant 2 : index
    %c0_25 = arith.constant 0 : index
    %c0_26 = arith.constant 0 : index
    %38 = vector.load %arg5[%c2, %c0_25, %c0_26] : memref<32x8x32xf32, #tpu.memory_space<vmem>>, vector<1x8x32xf32>
    %39 = vector.shape_cast %38 : vector<1x8x32xf32> to vector<8x32xf32>
    %cst_27 = arith.constant dense<0.000000e+00> : vector<8x32xf32>
    %40 = tpu.matmul %37, %39, %cst_27 {dimension_numbers = #tpu.dot_dimension_numbers<[1], [0], [0], [1], [0, 0, 1, 1], [], []>} : vector<8x8xf32>, vector<8x32xf32>, vector<8x32xf32> -> vector<8x32xf32>
    %c0_28 = arith.constant 0 : index
    %c0_29 = arith.constant 0 : index
    %41 = vector.load %arg7[%c0_28, %c0_29] : memref<8x32xf32, #tpu.memory_space<vmem>>, vector<8x32xf32>
    %cst_30 = arith.constant 0.000000e+00 : f32
    %42 = vector.broadcast %cst_30 : f32 to vector<8x32xf32>
    %43 = arith.maximumf %40, %42 : vector<8x32xf32>
    %44 = arith.addf %41, %43 : vector<8x32xf32>
    %c0_31 = arith.constant 0 : index
    %c0_32 = arith.constant 0 : index
    %45 = vector.load %arg7[%c0_31, %c0_32] : memref<8x32xf32, #tpu.memory_space<vmem>>, vector<8x32xf32>
    tpu.vector_store %arg7[%c0_31, %c0_32], %44 {strides = array<i32>} : memref<8x32xf32, #tpu.memory_space<vmem>>, vector<8x32xf32>,
    %46 = vector.extract_strided_slice %7 {offsets = [0, 24], sizes = [8, 8], strides = [1, 1]} : vector<8x256xf32> to vector<8x8xf32>
    %47 = vector.extract_strided_slice %9 {offsets = [0, 3], sizes = [8, 1], strides = [1, 1]} : vector<8x32xf32> to vector<8x1xf32>
    %48 = vector.broadcast %47 : vector<8x1xf32> to vector<8x8xf32>
    %49 = arith.mulf %46, %48 : vector<8x8xf32>
    %c3 = arith.constant 3 : index
    %c0_33 = arith.constant 0 : index
    %c0_34 = arith.constant 0 : index
    %50 = vector.load %arg5[%c3, %c0_33, %c0_34] : memref<32x8x32xf32, #tpu.memory_space<vmem>>, vector<1x8x32xf32>
    %51 = vector.shape_cast %50 : vector<1x8x32xf32> to vector<8x32xf32>
    %cst_35 = arith.constant dense<0.000000e+00> : vector<8x32xf32>
    %52 = tpu.matmul %49, %51, %cst_35 {dimension_numbers = #tpu.dot_dimension_numbers<[1], [0], [0], [1], [0, 0, 1, 1], [], []>} : vector<8x8xf32>, vector<8x32xf32>, vector<8x32xf32> -> vector<8x32xf32>
    %c0_36 = arith.constant 0 : index
    %c0_37 = arith.constant 0 : index
    %53 = vector.load %arg7[%c0_36, %c0_37] : memref<8x32xf32, #tpu.memory_space<vmem>>, vector<8x32xf32>
    %cst_38 = arith.constant 0.000000e+00 : f32
    %54 = vector.broadcast %cst_38 : f32 to vector<8x32xf32>
    %55 = arith.maximumf %52, %54 : vector<8x32xf32>
    %56 = arith.addf %53, %55 : vector<8x32xf32>
    %c0_39 = arith.constant 0 : index
    %c0_40 = arith.constant 0 : index
    %57 = vector.load %arg7[%c0_39, %c0_40] : memref<8x32xf32, #tpu.memory_space<vmem>>, vector<8x32xf32>
    tpu.vector_store %arg7[%c0_39, %c0_40], %56 {strides = array<i32>} : memref<8x32xf32, #tpu.memory_space<vmem>>, vector<8x32xf32>,
    %58 = vector.extract_strided_slice %7 {offsets = [0, 32], sizes = [8, 8], strides = [1, 1]} : vector<8x256xf32> to vector<8x8xf32>
    %59 = vector.extract_strided_slice %9 {offsets = [0, 4], sizes = [8, 1], strides = [1, 1]} : vector<8x32xf32> to vector<8x1xf32>
    %60 = vector.broadcast %59 : vector<8x1xf32> to vector<8x8xf32>
    %61 = arith.mulf %58, %60 : vector<8x8xf32>
    %c4 = arith.constant 4 : index
    %c0_41 = arith.constant 0 : index
    %c0_42 = arith.constant 0 : index
    %62 = vector.load %arg5[%c4, %c0_41, %c0_42] : memref<32x8x32xf32, #tpu.memory_space<vmem>>, vector<1x8x32xf32>
    %63 = vector.shape_cast %62 : vector<1x8x32xf32> to vector<8x32xf32>
    %cst_43 = arith.constant dense<0.000000e+00> : vector<8x32xf32>
    %64 = tpu.matmul %61, %63, %cst_43 {dimension_numbers = #tpu.dot_dimension_numbers<[1], [0], [0], [1], [0, 0, 1, 1], [], []>} : vector<8x8xf32>, vector<8x32xf32>, vector<8x32xf32> -> vector<8x32xf32>
    %c0_44 = arith.constant 0 : index
    %c0_45 = arith.constant 0 : index
    %65 = vector.load %arg7[%c0_44, %c0_45] : memref<8x32xf32, #tpu.memory_space<vmem>>, vector<8x32xf32>
    %cst_46 = arith.constant 0.000000e+00 : f32
    %66 = vector.broadcast %cst_46 : f32 to vector<8x32xf32>
    %67 = arith.maximumf %64, %66 : vector<8x32xf32>
    %68 = arith.addf %65, %67 : vector<8x32xf32>
    %c0_47 = arith.constant 0 : index
    %c0_48 = arith.constant 0 : index
    %69 = vector.load %arg7[%c0_47, %c0_48] : memref<8x32xf32, #tpu.memory_space<vmem>>, vector<8x32xf32>
    tpu.vector_store %arg7[%c0_47, %c0_48], %68 {strides = array<i32>} : memref<8x32xf32, #tpu.memory_space<vmem>>, vector<8x32xf32>,
    %70 = vector.extract_strided_slice %7 {offsets = [0, 40], sizes = [8, 8], strides = [1, 1]} : vector<8x256xf32> to vector<8x8xf32>
    %71 = vector.extract_strided_slice %9 {offsets = [0, 5], sizes = [8, 1], strides = [1, 1]} : vector<8x32xf32> to vector<8x1xf32>
    %72 = vector.broadcast %71 : vector<8x1xf32> to vector<8x8xf32>
    %73 = arith.mulf %70, %72 : vector<8x8xf32>
    %c5 = arith.constant 5 : index
    %c0_49 = arith.constant 0 : index
    %c0_50 = arith.constant 0 : index
    %74 = vector.load %arg5[%c5, %c0_49, %c0_50] : memref<32x8x32xf32, #tpu.memory_space<vmem>>, vector<1x8x32xf32>
    %75 = vector.shape_cast %74 : vector<1x8x32xf32> to vector<8x32xf32>
    %cst_51 = arith.constant dense<0.000000e+00> : vector<8x32xf32>
    %76 = tpu.matmul %73, %75, %cst_51 {dimension_numbers = #tpu.dot_dimension_numbers<[1], [0], [0], [1], [0, 0, 1, 1], [], []>} : vector<8x8xf32>, vector<8x32xf32>, vector<8x32xf32> -> vector<8x32xf32>
    %c0_52 = arith.constant 0 : index
    %c0_53 = arith.constant 0 : index
    %77 = vector.load %arg7[%c0_52, %c0_53] : memref<8x32xf32, #tpu.memory_space<vmem>>, vector<8x32xf32>
    %cst_54 = arith.constant 0.000000e+00 : f32
    %78 = vector.broadcast %cst_54 : f32 to vector<8x32xf32>
    %79 = arith.maximumf %76, %78 : vector<8x32xf32>
    %80 = arith.addf %77, %79 : vector<8x32xf32>
    %c0_55 = arith.constant 0 : index
    %c0_56 = arith.constant 0 : index
    %81 = vector.load %arg7[%c0_55, %c0_56] : memref<8x32xf32, #tpu.memory_space<vmem>>, vector<8x32xf32>
    tpu.vector_store %arg7[%c0_55, %c0_56], %80 {strides = array<i32>} : memref<8x32xf32, #tpu.memory_space<vmem>>, vector<8x32xf32>,
    %82 = vector.extract_strided_slice %7 {offsets = [0, 48], sizes = [8, 8], strides = [1, 1]} : vector<8x256xf32> to vector<8x8xf32>
    %83 = vector.extract_strided_slice %9 {offsets = [0, 6], sizes = [8, 1], strides = [1, 1]} : vector<8x32xf32> to vector<8x1xf32>
    %84 = vector.broadcast %83 : vector<8x1xf32> to vector<8x8xf32>
    %85 = arith.mulf %82, %84 : vector<8x8xf32>
    %c6 = arith.constant 6 : index
    %c0_57 = arith.constant 0 : index
    %c0_58 = arith.constant 0 : index
    %86 = vector.load %arg5[%c6, %c0_57, %c0_58] : memref<32x8x32xf32, #tpu.memory_space<vmem>>, vector<1x8x32xf32>
    %87 = vector.shape_cast %86 : vector<1x8x32xf32> to vector<8x32xf32>
    %cst_59 = arith.constant dense<0.000000e+00> : vector<8x32xf32>
    %88 = tpu.matmul %85, %87, %cst_59 {dimension_numbers = #tpu.dot_dimension_numbers<[1], [0], [0], [1], [0, 0, 1, 1], [], []>} : vector<8x8xf32>, vector<8x32xf32>, vector<8x32xf32> -> vector<8x32xf32>
    %c0_60 = arith.constant 0 : index
    %c0_61 = arith.constant 0 : index
    %89 = vector.load %arg7[%c0_60, %c0_61] : memref<8x32xf32, #tpu.memory_space<vmem>>, vector<8x32xf32>
    %cst_62 = arith.constant 0.000000e+00 : f32
    %90 = vector.broadcast %cst_62 : f32 to vector<8x32xf32>
    %91 = arith.maximumf %88, %90 : vector<8x32xf32>
    %92 = arith.addf %89, %91 : vector<8x32xf32>
    %c0_63 = arith.constant 0 : index
    %c0_64 = arith.constant 0 : index
    %93 = vector.load %arg7[%c0_63, %c0_64] : memref<8x32xf32, #tpu.memory_space<vmem>>, vector<8x32xf32>
    tpu.vector_store %arg7[%c0_63, %c0_64], %92 {strides = array<i32>} : memref<8x32xf32, #tpu.memory_space<vmem>>, vector<8x32xf32>,
    %94 = vector.extract_strided_slice %7 {offsets = [0, 56], sizes = [8, 8], strides = [1, 1]} : vector<8x256xf32> to vector<8x8xf32>
    %95 = vector.extract_strided_slice %9 {offsets = [0, 7], sizes = [8, 1], strides = [1, 1]} : vector<8x32xf32> to vector<8x1xf32>
    %96 = vector.broadcast %95 : vector<8x1xf32> to vector<8x8xf32>
    %97 = arith.mulf %94, %96 : vector<8x8xf32>
    %c7 = arith.constant 7 : index
    %c0_65 = arith.constant 0 : index
    %c0_66 = arith.constant 0 : index
    %98 = vector.load %arg5[%c7, %c0_65, %c0_66] : memref<32x8x32xf32, #tpu.memory_space<vmem>>, vector<1x8x32xf32>
    %99 = vector.shape_cast %98 : vector<1x8x32xf32> to vector<8x32xf32>
    %cst_67 = arith.constant dense<0.000000e+00> : vector<8x32xf32>
    %100 = tpu.matmul %97, %99, %cst_67 {dimension_numbers = #tpu.dot_dimension_numbers<[1], [0], [0], [1], [0, 0, 1, 1], [], []>} : vector<8x8xf32>, vector<8x32xf32>, vector<8x32xf32> -> vector<8x32xf32>
    %c0_68 = arith.constant 0 : index
    %c0_69 = arith.constant 0 : index
    %101 = vector.load %arg7[%c0_68, %c0_69] : memref<8x32xf32, #tpu.memory_space<vmem>>, vector<8x32xf32>
    %cst_70 = arith.constant 0.000000e+00 : f32
    %102 = vector.broadcast %cst_70 : f32 to vector<8x32xf32>
    %103 = arith.maximumf %100, %102 : vector<8x32xf32>
    %104 = arith.addf %101, %103 : vector<8x32xf32>
    %c0_71 = arith.constant 0 : index
    %c0_72 = arith.constant 0 : index
    %105 = vector.load %arg7[%c0_71, %c0_72] : memref<8x32xf32, #tpu.memory_space<vmem>>, vector<8x32xf32>
    tpu.vector_store %arg7[%c0_71, %c0_72], %104 {strides = array<i32>} : memref<8x32xf32, #tpu.memory_space<vmem>>, vector<8x32xf32>,
    %106 = vector.extract_strided_slice %7 {offsets = [0, 64], sizes = [8, 8], strides = [1, 1]} : vector<8x256xf32> to vector<8x8xf32>
    %107 = vector.extract_strided_slice %9 {offsets = [0, 8], sizes = [8, 1], strides = [1, 1]} : vector<8x32xf32> to vector<8x1xf32>
    %108 = vector.broadcast %107 : vector<8x1xf32> to vector<8x8xf32>
    %109 = arith.mulf %106, %108 : vector<8x8xf32>
    %c8 = arith.constant 8 : index
    %c0_73 = arith.constant 0 : index
    %c0_74 = arith.constant 0 : index
    %110 = vector.load %arg5[%c8, %c0_73, %c0_74] : memref<32x8x32xf32, #tpu.memory_space<vmem>>, vector<1x8x32xf32>
    %111 = vector.shape_cast %110 : vector<1x8x32xf32> to vector<8x32xf32>
    %cst_75 = arith.constant dense<0.000000e+00> : vector<8x32xf32>
    %112 = tpu.matmul %109, %111, %cst_75 {dimension_numbers = #tpu.dot_dimension_numbers<[1], [0], [0], [1], [0, 0, 1, 1], [], []>} : vector<8x8xf32>, vector<8x32xf32>, vector<8x32xf32> -> vector<8x32xf32>
    %c0_76 = arith.constant 0 : index
    %c0_77 = arith.constant 0 : index
    %113 = vector.load %arg7[%c0_76, %c0_77] : memref<8x32xf32, #tpu.memory_space<vmem>>, vector<8x32xf32>
    %cst_78 = arith.constant 0.000000e+00 : f32
    %114 = vector.broadcast %cst_78 : f32 to vector<8x32xf32>
    %115 = arith.maximumf %112, %114 : vector<8x32xf32>
    %116 = arith.addf %113, %115 : vector<8x32xf32>
    %c0_79 = arith.constant 0 : index
    %c0_80 = arith.constant 0 : index
    %117 = vector.load %arg7[%c0_79, %c0_80] : memref<8x32xf32, #tpu.memory_space<vmem>>, vector<8x32xf32>
    tpu.vector_store %arg7[%c0_79, %c0_80], %116 {strides = array<i32>} : memref<8x32xf32, #tpu.memory_space<vmem>>, vector<8x32xf32>,
    %118 = vector.extract_strided_slice %7 {offsets = [0, 72], sizes = [8, 8], strides = [1, 1]} : vector<8x256xf32> to vector<8x8xf32>
    %119 = vector.extract_strided_slice %9 {offsets = [0, 9], sizes = [8, 1], strides = [1, 1]} : vector<8x32xf32> to vector<8x1xf32>
    %120 = vector.broadcast %119 : vector<8x1xf32> to vector<8x8xf32>
    %121 = arith.mulf %118, %120 : vector<8x8xf32>
    %c9 = arith.constant 9 : index
    %c0_81 = arith.constant 0 : index
    %c0_82 = arith.constant 0 : index
    %122 = vector.load %arg5[%c9, %c0_81, %c0_82] : memref<32x8x32xf32, #tpu.memory_space<vmem>>, vector<1x8x32xf32>
    %123 = vector.shape_cast %122 : vector<1x8x32xf32> to vector<8x32xf32>
    %cst_83 = arith.constant dense<0.000000e+00> : vector<8x32xf32>
    %124 = tpu.matmul %121, %123, %cst_83 {dimension_numbers = #tpu.dot_dimension_numbers<[1], [0], [0], [1], [0, 0, 1, 1], [], []>} : vector<8x8xf32>, vector<8x32xf32>, vector<8x32xf32> -> vector<8x32xf32>
    %c0_84 = arith.constant 0 : index
    %c0_85 = arith.constant 0 : index
    %125 = vector.load %arg7[%c0_84, %c0_85] : memref<8x32xf32, #tpu.memory_space<vmem>>, vector<8x32xf32>
    %cst_86 = arith.constant 0.000000e+00 : f32
    %126 = vector.broadcast %cst_86 : f32 to vector<8x32xf32>
    %127 = arith.maximumf %124, %126 : vector<8x32xf32>
    %128 = arith.addf %125, %127 : vector<8x32xf32>
    %c0_87 = arith.constant 0 : index
    %c0_88 = arith.constant 0 : index
    %129 = vector.load %arg7[%c0_87, %c0_88] : memref<8x32xf32, #tpu.memory_space<vmem>>, vector<8x32xf32>
    tpu.vector_store %arg7[%c0_87, %c0_88], %128 {strides = array<i32>} : memref<8x32xf32, #tpu.memory_space<vmem>>, vector<8x32xf32>,
    %130 = vector.extract_strided_slice %7 {offsets = [0, 80], sizes = [8, 8], strides = [1, 1]} : vector<8x256xf32> to vector<8x8xf32>
    %131 = vector.extract_strided_slice %9 {offsets = [0, 10], sizes = [8, 1], strides = [1, 1]} : vector<8x32xf32> to vector<8x1xf32>
    %132 = vector.broadcast %131 : vector<8x1xf32> to vector<8x8xf32>
    %133 = arith.mulf %130, %132 : vector<8x8xf32>
    %c10 = arith.constant 10 : index
    %c0_89 = arith.constant 0 : index
    %c0_90 = arith.constant 0 : index
    %134 = vector.load %arg5[%c10, %c0_89, %c0_90] : memref<32x8x32xf32, #tpu.memory_space<vmem>>, vector<1x8x32xf32>
    %135 = vector.shape_cast %134 : vector<1x8x32xf32> to vector<8x32xf32>
    %cst_91 = arith.constant dense<0.000000e+00> : vector<8x32xf32>
    %136 = tpu.matmul %133, %135, %cst_91 {dimension_numbers = #tpu.dot_dimension_numbers<[1], [0], [0], [1], [0, 0, 1, 1], [], []>} : vector<8x8xf32>, vector<8x32xf32>, vector<8x32xf32> -> vector<8x32xf32>
    %c0_92 = arith.constant 0 : index
    %c0_93 = arith.constant 0 : index
    %137 = vector.load %arg7[%c0_92, %c0_93] : memref<8x32xf32, #tpu.memory_space<vmem>>, vector<8x32xf32>
    %cst_94 = arith.constant 0.000000e+00 : f32
    %138 = vector.broadcast %cst_94 : f32 to vector<8x32xf32>
    %139 = arith.maximumf %136, %138 : vector<8x32xf32>
    %140 = arith.addf %137, %139 : vector<8x32xf32>
    %c0_95 = arith.constant 0 : index
    %c0_96 = arith.constant 0 : index
    %141 = vector.load %arg7[%c0_95, %c0_96] : memref<8x32xf32, #tpu.memory_space<vmem>>, vector<8x32xf32>
    tpu.vector_store %arg7[%c0_95, %c0_96], %140 {strides = array<i32>} : memref<8x32xf32, #tpu.memory_space<vmem>>, vector<8x32xf32>,
    %142 = vector.extract_strided_slice %7 {offsets = [0, 88], sizes = [8, 8], strides = [1, 1]} : vector<8x256xf32> to vector<8x8xf32>
    %143 = vector.extract_strided_slice %9 {offsets = [0, 11], sizes = [8, 1], strides = [1, 1]} : vector<8x32xf32> to vector<8x1xf32>
    %144 = vector.broadcast %143 : vector<8x1xf32> to vector<8x8xf32>
    %145 = arith.mulf %142, %144 : vector<8x8xf32>
    %c11 = arith.constant 11 : index
    %c0_97 = arith.constant 0 : index
    %c0_98 = arith.constant 0 : index
    %146 = vector.load %arg5[%c11, %c0_97, %c0_98] : memref<32x8x32xf32, #tpu.memory_space<vmem>>, vector<1x8x32xf32>
    %147 = vector.shape_cast %146 : vector<1x8x32xf32> to vector<8x32xf32>
    %cst_99 = arith.constant dense<0.000000e+00> : vector<8x32xf32>
    %148 = tpu.matmul %145, %147, %cst_99 {dimension_numbers = #tpu.dot_dimension_numbers<[1], [0], [0], [1], [0, 0, 1, 1], [], []>} : vector<8x8xf32>, vector<8x32xf32>, vector<8x32xf32> -> vector<8x32xf32>
    %c0_100 = arith.constant 0 : index
    %c0_101 = arith.constant 0 : index
    %149 = vector.load %arg7[%c0_100, %c0_101] : memref<8x32xf32, #tpu.memory_space<vmem>>, vector<8x32xf32>
    %cst_102 = arith.constant 0.000000e+00 : f32
    %150 = vector.broadcast %cst_102 : f32 to vector<8x32xf32>
    %151 = arith.maximumf %148, %150 : vector<8x32xf32>
    %152 = arith.addf %149, %151 : vector<8x32xf32>
    %c0_103 = arith.constant 0 : index
    %c0_104 = arith.constant 0 : index
    %153 = vector.load %arg7[%c0_103, %c0_104] : memref<8x32xf32, #tpu.memory_space<vmem>>, vector<8x32xf32>
    tpu.vector_store %arg7[%c0_103, %c0_104], %152 {strides = array<i32>} : memref<8x32xf32, #tpu.memory_space<vmem>>, vector<8x32xf32>,
    %154 = vector.extract_strided_slice %7 {offsets = [0, 96], sizes = [8, 8], strides = [1, 1]} : vector<8x256xf32> to vector<8x8xf32>
    %155 = vector.extract_strided_slice %9 {offsets = [0, 12], sizes = [8, 1], strides = [1, 1]} : vector<8x32xf32> to vector<8x1xf32>
    %156 = vector.broadcast %155 : vector<8x1xf32> to vector<8x8xf32>
    %157 = arith.mulf %154, %156 : vector<8x8xf32>
    %c12 = arith.constant 12 : index
    %c0_105 = arith.constant 0 : index
    %c0_106 = arith.constant 0 : index
    %158 = vector.load %arg5[%c12, %c0_105, %c0_106] : memref<32x8x32xf32, #tpu.memory_space<vmem>>, vector<1x8x32xf32>
    %159 = vector.shape_cast %158 : vector<1x8x32xf32> to vector<8x32xf32>
    %cst_107 = arith.constant dense<0.000000e+00> : vector<8x32xf32>
    %160 = tpu.matmul %157, %159, %cst_107 {dimension_numbers = #tpu.dot_dimension_numbers<[1], [0], [0], [1], [0, 0, 1, 1], [], []>} : vector<8x8xf32>, vector<8x32xf32>, vector<8x32xf32> -> vector<8x32xf32>
    %c0_108 = arith.constant 0 : index
    %c0_109 = arith.constant 0 : index
    %161 = vector.load %arg7[%c0_108, %c0_109] : memref<8x32xf32, #tpu.memory_space<vmem>>, vector<8x32xf32>
    %cst_110 = arith.constant 0.000000e+00 : f32
    %162 = vector.broadcast %cst_110 : f32 to vector<8x32xf32>
    %163 = arith.maximumf %160, %162 : vector<8x32xf32>
    %164 = arith.addf %161, %163 : vector<8x32xf32>
    %c0_111 = arith.constant 0 : index
    %c0_112 = arith.constant 0 : index
    %165 = vector.load %arg7[%c0_111, %c0_112] : memref<8x32xf32, #tpu.memory_space<vmem>>, vector<8x32xf32>
    tpu.vector_store %arg7[%c0_111, %c0_112], %164 {strides = array<i32>} : memref<8x32xf32, #tpu.memory_space<vmem>>, vector<8x32xf32>,
    %166 = vector.extract_strided_slice %7 {offsets = [0, 104], sizes = [8, 8], strides = [1, 1]} : vector<8x256xf32> to vector<8x8xf32>
    %167 = vector.extract_strided_slice %9 {offsets = [0, 13], sizes = [8, 1], strides = [1, 1]} : vector<8x32xf32> to vector<8x1xf32>
    %168 = vector.broadcast %167 : vector<8x1xf32> to vector<8x8xf32>
    %169 = arith.mulf %166, %168 : vector<8x8xf32>
    %c13 = arith.constant 13 : index
    %c0_113 = arith.constant 0 : index
    %c0_114 = arith.constant 0 : index
    %170 = vector.load %arg5[%c13, %c0_113, %c0_114] : memref<32x8x32xf32, #tpu.memory_space<vmem>>, vector<1x8x32xf32>
    %171 = vector.shape_cast %170 : vector<1x8x32xf32> to vector<8x32xf32>
    %cst_115 = arith.constant dense<0.000000e+00> : vector<8x32xf32>
    %172 = tpu.matmul %169, %171, %cst_115 {dimension_numbers = #tpu.dot_dimension_numbers<[1], [0], [0], [1], [0, 0, 1, 1], [], []>} : vector<8x8xf32>, vector<8x32xf32>, vector<8x32xf32> -> vector<8x32xf32>
    %c0_116 = arith.constant 0 : index
    %c0_117 = arith.constant 0 : index
    %173 = vector.load %arg7[%c0_116, %c0_117] : memref<8x32xf32, #tpu.memory_space<vmem>>, vector<8x32xf32>
    %cst_118 = arith.constant 0.000000e+00 : f32
    %174 = vector.broadcast %cst_118 : f32 to vector<8x32xf32>
    %175 = arith.maximumf %172, %174 : vector<8x32xf32>
    %176 = arith.addf %173, %175 : vector<8x32xf32>
    %c0_119 = arith.constant 0 : index
    %c0_120 = arith.constant 0 : index
    %177 = vector.load %arg7[%c0_119, %c0_120] : memref<8x32xf32, #tpu.memory_space<vmem>>, vector<8x32xf32>
    tpu.vector_store %arg7[%c0_119, %c0_120], %176 {strides = array<i32>} : memref<8x32xf32, #tpu.memory_space<vmem>>, vector<8x32xf32>,
    %178 = vector.extract_strided_slice %7 {offsets = [0, 112], sizes = [8, 8], strides = [1, 1]} : vector<8x256xf32> to vector<8x8xf32>
    %179 = vector.extract_strided_slice %9 {offsets = [0, 14], sizes = [8, 1], strides = [1, 1]} : vector<8x32xf32> to vector<8x1xf32>
    %180 = vector.broadcast %179 : vector<8x1xf32> to vector<8x8xf32>
    %181 = arith.mulf %178, %180 : vector<8x8xf32>
    %c14 = arith.constant 14 : index
    %c0_121 = arith.constant 0 : index
    %c0_122 = arith.constant 0 : index
    %182 = vector.load %arg5[%c14, %c0_121, %c0_122] : memref<32x8x32xf32, #tpu.memory_space<vmem>>, vector<1x8x32xf32>
    %183 = vector.shape_cast %182 : vector<1x8x32xf32> to vector<8x32xf32>
    %cst_123 = arith.constant dense<0.000000e+00> : vector<8x32xf32>
    %184 = tpu.matmul %181, %183, %cst_123 {dimension_numbers = #tpu.dot_dimension_numbers<[1], [0], [0], [1], [0, 0, 1, 1], [], []>} : vector<8x8xf32>, vector<8x32xf32>, vector<8x32xf32> -> vector<8x32xf32>
    %c0_124 = arith.constant 0 : index
    %c0_125 = arith.constant 0 : index
    %185 = vector.load %arg7[%c0_124, %c0_125] : memref<8x32xf32, #tpu.memory_space<vmem>>, vector<8x32xf32>
    %cst_126 = arith.constant 0.000000e+00 : f32
    %186 = vector.broadcast %cst_126 : f32 to vector<8x32xf32>
    %187 = arith.maximumf %184, %186 : vector<8x32xf32>
    %188 = arith.addf %185, %187 : vector<8x32xf32>
    %c0_127 = arith.constant 0 : index
    %c0_128 = arith.constant 0 : index
    %189 = vector.load %arg7[%c0_127, %c0_128] : memref<8x32xf32, #tpu.memory_space<vmem>>, vector<8x32xf32>
    tpu.vector_store %arg7[%c0_127, %c0_128], %188 {strides = array<i32>} : memref<8x32xf32, #tpu.memory_space<vmem>>, vector<8x32xf32>,
    %190 = vector.extract_strided_slice %7 {offsets = [0, 120], sizes = [8, 8], strides = [1, 1]} : vector<8x256xf32> to vector<8x8xf32>
    %191 = vector.extract_strided_slice %9 {offsets = [0, 15], sizes = [8, 1], strides = [1, 1]} : vector<8x32xf32> to vector<8x1xf32>
    %192 = vector.broadcast %191 : vector<8x1xf32> to vector<8x8xf32>
    %193 = arith.mulf %190, %192 : vector<8x8xf32>
    %c15 = arith.constant 15 : index
    %c0_129 = arith.constant 0 : index
    %c0_130 = arith.constant 0 : index
    %194 = vector.load %arg5[%c15, %c0_129, %c0_130] : memref<32x8x32xf32, #tpu.memory_space<vmem>>, vector<1x8x32xf32>
    %195 = vector.shape_cast %194 : vector<1x8x32xf32> to vector<8x32xf32>
    %cst_131 = arith.constant dense<0.000000e+00> : vector<8x32xf32>
    %196 = tpu.matmul %193, %195, %cst_131 {dimension_numbers = #tpu.dot_dimension_numbers<[1], [0], [0], [1], [0, 0, 1, 1], [], []>} : vector<8x8xf32>, vector<8x32xf32>, vector<8x32xf32> -> vector<8x32xf32>
    %c0_132 = arith.constant 0 : index
    %c0_133 = arith.constant 0 : index
    %197 = vector.load %arg7[%c0_132, %c0_133] : memref<8x32xf32, #tpu.memory_space<vmem>>, vector<8x32xf32>
    %cst_134 = arith.constant 0.000000e+00 : f32
    %198 = vector.broadcast %cst_134 : f32 to vector<8x32xf32>
    %199 = arith.maximumf %196, %198 : vector<8x32xf32>
    %200 = arith.addf %197, %199 : vector<8x32xf32>
    %c0_135 = arith.constant 0 : index
    %c0_136 = arith.constant 0 : index
    %201 = vector.load %arg7[%c0_135, %c0_136] : memref<8x32xf32, #tpu.memory_space<vmem>>, vector<8x32xf32>
    tpu.vector_store %arg7[%c0_135, %c0_136], %200 {strides = array<i32>} : memref<8x32xf32, #tpu.memory_space<vmem>>, vector<8x32xf32>,
    %202 = vector.extract_strided_slice %7 {offsets = [0, 128], sizes = [8, 8], strides = [1, 1]} : vector<8x256xf32> to vector<8x8xf32>
    %203 = vector.extract_strided_slice %9 {offsets = [0, 16], sizes = [8, 1], strides = [1, 1]} : vector<8x32xf32> to vector<8x1xf32>
    %204 = vector.broadcast %203 : vector<8x1xf32> to vector<8x8xf32>
    %205 = arith.mulf %202, %204 : vector<8x8xf32>
    %c16 = arith.constant 16 : index
    %c0_137 = arith.constant 0 : index
    %c0_138 = arith.constant 0 : index
    %206 = vector.load %arg5[%c16, %c0_137, %c0_138] : memref<32x8x32xf32, #tpu.memory_space<vmem>>, vector<1x8x32xf32>
    %207 = vector.shape_cast %206 : vector<1x8x32xf32> to vector<8x32xf32>
    %cst_139 = arith.constant dense<0.000000e+00> : vector<8x32xf32>
    %208 = tpu.matmul %205, %207, %cst_139 {dimension_numbers = #tpu.dot_dimension_numbers<[1], [0], [0], [1], [0, 0, 1, 1], [], []>} : vector<8x8xf32>, vector<8x32xf32>, vector<8x32xf32> -> vector<8x32xf32>
    %c0_140 = arith.constant 0 : index
    %c0_141 = arith.constant 0 : index
    %209 = vector.load %arg7[%c0_140, %c0_141] : memref<8x32xf32, #tpu.memory_space<vmem>>, vector<8x32xf32>
    %cst_142 = arith.constant 0.000000e+00 : f32
    %210 = vector.broadcast %cst_142 : f32 to vector<8x32xf32>
    %211 = arith.maximumf %208, %210 : vector<8x32xf32>
    %212 = arith.addf %209, %211 : vector<8x32xf32>
    %c0_143 = arith.constant 0 : index
    %c0_144 = arith.constant 0 : index
    %213 = vector.load %arg7[%c0_143, %c0_144] : memref<8x32xf32, #tpu.memory_space<vmem>>, vector<8x32xf32>
    tpu.vector_store %arg7[%c0_143, %c0_144], %212 {strides = array<i32>} : memref<8x32xf32, #tpu.memory_space<vmem>>, vector<8x32xf32>,
    %214 = vector.extract_strided_slice %7 {offsets = [0, 136], sizes = [8, 8], strides = [1, 1]} : vector<8x256xf32> to vector<8x8xf32>
    %215 = vector.extract_strided_slice %9 {offsets = [0, 17], sizes = [8, 1], strides = [1, 1]} : vector<8x32xf32> to vector<8x1xf32>
    %216 = vector.broadcast %215 : vector<8x1xf32> to vector<8x8xf32>
    %217 = arith.mulf %214, %216 : vector<8x8xf32>
    %c17 = arith.constant 17 : index
    %c0_145 = arith.constant 0 : index
    %c0_146 = arith.constant 0 : index
    %218 = vector.load %arg5[%c17, %c0_145, %c0_146] : memref<32x8x32xf32, #tpu.memory_space<vmem>>, vector<1x8x32xf32>
    %219 = vector.shape_cast %218 : vector<1x8x32xf32> to vector<8x32xf32>
    %cst_147 = arith.constant dense<0.000000e+00> : vector<8x32xf32>
    %220 = tpu.matmul %217, %219, %cst_147 {dimension_numbers = #tpu.dot_dimension_numbers<[1], [0], [0], [1], [0, 0, 1, 1], [], []>} : vector<8x8xf32>, vector<8x32xf32>, vector<8x32xf32> -> vector<8x32xf32>
    %c0_148 = arith.constant 0 : index
    %c0_149 = arith.constant 0 : index
    %221 = vector.load %arg7[%c0_148, %c0_149] : memref<8x32xf32, #tpu.memory_space<vmem>>, vector<8x32xf32>
    %cst_150 = arith.constant 0.000000e+00 : f32
    %222 = vector.broadcast %cst_150 : f32 to vector<8x32xf32>
    %223 = arith.maximumf %220, %222 : vector<8x32xf32>
    %224 = arith.addf %221, %223 : vector<8x32xf32>
    %c0_151 = arith.constant 0 : index
    %c0_152 = arith.constant 0 : index
    %225 = vector.load %arg7[%c0_151, %c0_152] : memref<8x32xf32, #tpu.memory_space<vmem>>, vector<8x32xf32>
    tpu.vector_store %arg7[%c0_151, %c0_152], %224 {strides = array<i32>} : memref<8x32xf32, #tpu.memory_space<vmem>>, vector<8x32xf32>,
    %226 = vector.extract_strided_slice %7 {offsets = [0, 144], sizes = [8, 8], strides = [1, 1]} : vector<8x256xf32> to vector<8x8xf32>
    %227 = vector.extract_strided_slice %9 {offsets = [0, 18], sizes = [8, 1], strides = [1, 1]} : vector<8x32xf32> to vector<8x1xf32>
    %228 = vector.broadcast %227 : vector<8x1xf32> to vector<8x8xf32>
    %229 = arith.mulf %226, %228 : vector<8x8xf32>
    %c18 = arith.constant 18 : index
    %c0_153 = arith.constant 0 : index
    %c0_154 = arith.constant 0 : index
    %230 = vector.load %arg5[%c18, %c0_153, %c0_154] : memref<32x8x32xf32, #tpu.memory_space<vmem>>, vector<1x8x32xf32>
    %231 = vector.shape_cast %230 : vector<1x8x32xf32> to vector<8x32xf32>
    %cst_155 = arith.constant dense<0.000000e+00> : vector<8x32xf32>
    %232 = tpu.matmul %229, %231, %cst_155 {dimension_numbers = #tpu.dot_dimension_numbers<[1], [0], [0], [1], [0, 0, 1, 1], [], []>} : vector<8x8xf32>, vector<8x32xf32>, vector<8x32xf32> -> vector<8x32xf32>
    %c0_156 = arith.constant 0 : index
    %c0_157 = arith.constant 0 : index
    %233 = vector.load %arg7[%c0_156, %c0_157] : memref<8x32xf32, #tpu.memory_space<vmem>>, vector<8x32xf32>
    %cst_158 = arith.constant 0.000000e+00 : f32
    %234 = vector.broadcast %cst_158 : f32 to vector<8x32xf32>
    %235 = arith.maximumf %232, %234 : vector<8x32xf32>
    %236 = arith.addf %233, %235 : vector<8x32xf32>
    %c0_159 = arith.constant 0 : index
    %c0_160 = arith.constant 0 : index
    %237 = vector.load %arg7[%c0_159, %c0_160] : memref<8x32xf32, #tpu.memory_space<vmem>>, vector<8x32xf32>
    tpu.vector_store %arg7[%c0_159, %c0_160], %236 {strides = array<i32>} : memref<8x32xf32, #tpu.memory_space<vmem>>, vector<8x32xf32>,
    %238 = vector.extract_strided_slice %7 {offsets = [0, 152], sizes = [8, 8], strides = [1, 1]} : vector<8x256xf32> to vector<8x8xf32>
    %239 = vector.extract_strided_slice %9 {offsets = [0, 19], sizes = [8, 1], strides = [1, 1]} : vector<8x32xf32> to vector<8x1xf32>
    %240 = vector.broadcast %239 : vector<8x1xf32> to vector<8x8xf32>
    %241 = arith.mulf %238, %240 : vector<8x8xf32>
    %c19 = arith.constant 19 : index
    %c0_161 = arith.constant 0 : index
    %c0_162 = arith.constant 0 : index
    %242 = vector.load %arg5[%c19, %c0_161, %c0_162] : memref<32x8x32xf32, #tpu.memory_space<vmem>>, vector<1x8x32xf32>
    %243 = vector.shape_cast %242 : vector<1x8x32xf32> to vector<8x32xf32>
    %cst_163 = arith.constant dense<0.000000e+00> : vector<8x32xf32>
    %244 = tpu.matmul %241, %243, %cst_163 {dimension_numbers = #tpu.dot_dimension_numbers<[1], [0], [0], [1], [0, 0, 1, 1], [], []>} : vector<8x8xf32>, vector<8x32xf32>, vector<8x32xf32> -> vector<8x32xf32>
    %c0_164 = arith.constant 0 : index
    %c0_165 = arith.constant 0 : index
    %245 = vector.load %arg7[%c0_164, %c0_165] : memref<8x32xf32, #tpu.memory_space<vmem>>, vector<8x32xf32>
    %cst_166 = arith.constant 0.000000e+00 : f32
    %246 = vector.broadcast %cst_166 : f32 to vector<8x32xf32>
    %247 = arith.maximumf %244, %246 : vector<8x32xf32>
    %248 = arith.addf %245, %247 : vector<8x32xf32>
    %c0_167 = arith.constant 0 : index
    %c0_168 = arith.constant 0 : index
    %249 = vector.load %arg7[%c0_167, %c0_168] : memref<8x32xf32, #tpu.memory_space<vmem>>, vector<8x32xf32>
    tpu.vector_store %arg7[%c0_167, %c0_168], %248 {strides = array<i32>} : memref<8x32xf32, #tpu.memory_space<vmem>>, vector<8x32xf32>,
    %250 = vector.extract_strided_slice %7 {offsets = [0, 160], sizes = [8, 8], strides = [1, 1]} : vector<8x256xf32> to vector<8x8xf32>
    %251 = vector.extract_strided_slice %9 {offsets = [0, 20], sizes = [8, 1], strides = [1, 1]} : vector<8x32xf32> to vector<8x1xf32>
    %252 = vector.broadcast %251 : vector<8x1xf32> to vector<8x8xf32>
    %253 = arith.mulf %250, %252 : vector<8x8xf32>
    %c20 = arith.constant 20 : index
    %c0_169 = arith.constant 0 : index
    %c0_170 = arith.constant 0 : index
    %254 = vector.load %arg5[%c20, %c0_169, %c0_170] : memref<32x8x32xf32, #tpu.memory_space<vmem>>, vector<1x8x32xf32>
    %255 = vector.shape_cast %254 : vector<1x8x32xf32> to vector<8x32xf32>
    %cst_171 = arith.constant dense<0.000000e+00> : vector<8x32xf32>
    %256 = tpu.matmul %253, %255, %cst_171 {dimension_numbers = #tpu.dot_dimension_numbers<[1], [0], [0], [1], [0, 0, 1, 1], [], []>} : vector<8x8xf32>, vector<8x32xf32>, vector<8x32xf32> -> vector<8x32xf32>
    %c0_172 = arith.constant 0 : index
    %c0_173 = arith.constant 0 : index
    %257 = vector.load %arg7[%c0_172, %c0_173] : memref<8x32xf32, #tpu.memory_space<vmem>>, vector<8x32xf32>
    %cst_174 = arith.constant 0.000000e+00 : f32
    %258 = vector.broadcast %cst_174 : f32 to vector<8x32xf32>
    %259 = arith.maximumf %256, %258 : vector<8x32xf32>
    %260 = arith.addf %257, %259 : vector<8x32xf32>
    %c0_175 = arith.constant 0 : index
    %c0_176 = arith.constant 0 : index
    %261 = vector.load %arg7[%c0_175, %c0_176] : memref<8x32xf32, #tpu.memory_space<vmem>>, vector<8x32xf32>
    tpu.vector_store %arg7[%c0_175, %c0_176], %260 {strides = array<i32>} : memref<8x32xf32, #tpu.memory_space<vmem>>, vector<8x32xf32>,
    %262 = vector.extract_strided_slice %7 {offsets = [0, 168], sizes = [8, 8], strides = [1, 1]} : vector<8x256xf32> to vector<8x8xf32>
    %263 = vector.extract_strided_slice %9 {offsets = [0, 21], sizes = [8, 1], strides = [1, 1]} : vector<8x32xf32> to vector<8x1xf32>
    %264 = vector.broadcast %263 : vector<8x1xf32> to vector<8x8xf32>
    %265 = arith.mulf %262, %264 : vector<8x8xf32>
    %c21 = arith.constant 21 : index
    %c0_177 = arith.constant 0 : index
    %c0_178 = arith.constant 0 : index
    %266 = vector.load %arg5[%c21, %c0_177, %c0_178] : memref<32x8x32xf32, #tpu.memory_space<vmem>>, vector<1x8x32xf32>
    %267 = vector.shape_cast %266 : vector<1x8x32xf32> to vector<8x32xf32>
    %cst_179 = arith.constant dense<0.000000e+00> : vector<8x32xf32>
    %268 = tpu.matmul %265, %267, %cst_179 {dimension_numbers = #tpu.dot_dimension_numbers<[1], [0], [0], [1], [0, 0, 1, 1], [], []>} : vector<8x8xf32>, vector<8x32xf32>, vector<8x32xf32> -> vector<8x32xf32>
    %c0_180 = arith.constant 0 : index
    %c0_181 = arith.constant 0 : index
    %269 = vector.load %arg7[%c0_180, %c0_181] : memref<8x32xf32, #tpu.memory_space<vmem>>, vector<8x32xf32>
    %cst_182 = arith.constant 0.000000e+00 : f32
    %270 = vector.broadcast %cst_182 : f32 to vector<8x32xf32>
    %271 = arith.maximumf %268, %270 : vector<8x32xf32>
    %272 = arith.addf %269, %271 : vector<8x32xf32>
    %c0_183 = arith.constant 0 : index
    %c0_184 = arith.constant 0 : index
    %273 = vector.load %arg7[%c0_183, %c0_184] : memref<8x32xf32, #tpu.memory_space<vmem>>, vector<8x32xf32>
    tpu.vector_store %arg7[%c0_183, %c0_184], %272 {strides = array<i32>} : memref<8x32xf32, #tpu.memory_space<vmem>>, vector<8x32xf32>,
    %274 = vector.extract_strided_slice %7 {offsets = [0, 176], sizes = [8, 8], strides = [1, 1]} : vector<8x256xf32> to vector<8x8xf32>
    %275 = vector.extract_strided_slice %9 {offsets = [0, 22], sizes = [8, 1], strides = [1, 1]} : vector<8x32xf32> to vector<8x1xf32>
    %276 = vector.broadcast %275 : vector<8x1xf32> to vector<8x8xf32>
    %277 = arith.mulf %274, %276 : vector<8x8xf32>
    %c22 = arith.constant 22 : index
    %c0_185 = arith.constant 0 : index
    %c0_186 = arith.constant 0 : index
    %278 = vector.load %arg5[%c22, %c0_185, %c0_186] : memref<32x8x32xf32, #tpu.memory_space<vmem>>, vector<1x8x32xf32>
    %279 = vector.shape_cast %278 : vector<1x8x32xf32> to vector<8x32xf32>
    %cst_187 = arith.constant dense<0.000000e+00> : vector<8x32xf32>
    %280 = tpu.matmul %277, %279, %cst_187 {dimension_numbers = #tpu.dot_dimension_numbers<[1], [0], [0], [1], [0, 0, 1, 1], [], []>} : vector<8x8xf32>, vector<8x32xf32>, vector<8x32xf32> -> vector<8x32xf32>
    %c0_188 = arith.constant 0 : index
    %c0_189 = arith.constant 0 : index
    %281 = vector.load %arg7[%c0_188, %c0_189] : memref<8x32xf32, #tpu.memory_space<vmem>>, vector<8x32xf32>
    %cst_190 = arith.constant 0.000000e+00 : f32
    %282 = vector.broadcast %cst_190 : f32 to vector<8x32xf32>
    %283 = arith.maximumf %280, %282 : vector<8x32xf32>
    %284 = arith.addf %281, %283 : vector<8x32xf32>
    %c0_191 = arith.constant 0 : index
    %c0_192 = arith.constant 0 : index
    %285 = vector.load %arg7[%c0_191, %c0_192] : memref<8x32xf32, #tpu.memory_space<vmem>>, vector<8x32xf32>
    tpu.vector_store %arg7[%c0_191, %c0_192], %284 {strides = array<i32>} : memref<8x32xf32, #tpu.memory_space<vmem>>, vector<8x32xf32>,
    %286 = vector.extract_strided_slice %7 {offsets = [0, 184], sizes = [8, 8], strides = [1, 1]} : vector<8x256xf32> to vector<8x8xf32>
    %287 = vector.extract_strided_slice %9 {offsets = [0, 23], sizes = [8, 1], strides = [1, 1]} : vector<8x32xf32> to vector<8x1xf32>
    %288 = vector.broadcast %287 : vector<8x1xf32> to vector<8x8xf32>
    %289 = arith.mulf %286, %288 : vector<8x8xf32>
    %c23 = arith.constant 23 : index
    %c0_193 = arith.constant 0 : index
    %c0_194 = arith.constant 0 : index
    %290 = vector.load %arg5[%c23, %c0_193, %c0_194] : memref<32x8x32xf32, #tpu.memory_space<vmem>>, vector<1x8x32xf32>
    %291 = vector.shape_cast %290 : vector<1x8x32xf32> to vector<8x32xf32>
    %cst_195 = arith.constant dense<0.000000e+00> : vector<8x32xf32>
    %292 = tpu.matmul %289, %291, %cst_195 {dimension_numbers = #tpu.dot_dimension_numbers<[1], [0], [0], [1], [0, 0, 1, 1], [], []>} : vector<8x8xf32>, vector<8x32xf32>, vector<8x32xf32> -> vector<8x32xf32>
    %c0_196 = arith.constant 0 : index
    %c0_197 = arith.constant 0 : index
    %293 = vector.load %arg7[%c0_196, %c0_197] : memref<8x32xf32, #tpu.memory_space<vmem>>, vector<8x32xf32>
    %cst_198 = arith.constant 0.000000e+00 : f32
    %294 = vector.broadcast %cst_198 : f32 to vector<8x32xf32>
    %295 = arith.maximumf %292, %294 : vector<8x32xf32>
    %296 = arith.addf %293, %295 : vector<8x32xf32>
    %c0_199 = arith.constant 0 : index
    %c0_200 = arith.constant 0 : index
    %297 = vector.load %arg7[%c0_199, %c0_200] : memref<8x32xf32, #tpu.memory_space<vmem>>, vector<8x32xf32>
    tpu.vector_store %arg7[%c0_199, %c0_200], %296 {strides = array<i32>} : memref<8x32xf32, #tpu.memory_space<vmem>>, vector<8x32xf32>,
    %298 = vector.extract_strided_slice %7 {offsets = [0, 192], sizes = [8, 8], strides = [1, 1]} : vector<8x256xf32> to vector<8x8xf32>
    %299 = vector.extract_strided_slice %9 {offsets = [0, 24], sizes = [8, 1], strides = [1, 1]} : vector<8x32xf32> to vector<8x1xf32>
    %300 = vector.broadcast %299 : vector<8x1xf32> to vector<8x8xf32>
    %301 = arith.mulf %298, %300 : vector<8x8xf32>
    %c24 = arith.constant 24 : index
    %c0_201 = arith.constant 0 : index
    %c0_202 = arith.constant 0 : index
    %302 = vector.load %arg5[%c24, %c0_201, %c0_202] : memref<32x8x32xf32, #tpu.memory_space<vmem>>, vector<1x8x32xf32>
    %303 = vector.shape_cast %302 : vector<1x8x32xf32> to vector<8x32xf32>
    %cst_203 = arith.constant dense<0.000000e+00> : vector<8x32xf32>
    %304 = tpu.matmul %301, %303, %cst_203 {dimension_numbers = #tpu.dot_dimension_numbers<[1], [0], [0], [1], [0, 0, 1, 1], [], []>} : vector<8x8xf32>, vector<8x32xf32>, vector<8x32xf32> -> vector<8x32xf32>
    %c0_204 = arith.constant 0 : index
    %c0_205 = arith.constant 0 : index
    %305 = vector.load %arg7[%c0_204, %c0_205] : memref<8x32xf32, #tpu.memory_space<vmem>>, vector<8x32xf32>
    %cst_206 = arith.constant 0.000000e+00 : f32
    %306 = vector.broadcast %cst_206 : f32 to vector<8x32xf32>
    %307 = arith.maximumf %304, %306 : vector<8x32xf32>
    %308 = arith.addf %305, %307 : vector<8x32xf32>
    %c0_207 = arith.constant 0 : index
    %c0_208 = arith.constant 0 : index
    %309 = vector.load %arg7[%c0_207, %c0_208] : memref<8x32xf32, #tpu.memory_space<vmem>>, vector<8x32xf32>
    tpu.vector_store %arg7[%c0_207, %c0_208], %308 {strides = array<i32>} : memref<8x32xf32, #tpu.memory_space<vmem>>, vector<8x32xf32>,
    %310 = vector.extract_strided_slice %7 {offsets = [0, 200], sizes = [8, 8], strides = [1, 1]} : vector<8x256xf32> to vector<8x8xf32>
    %311 = vector.extract_strided_slice %9 {offsets = [0, 25], sizes = [8, 1], strides = [1, 1]} : vector<8x32xf32> to vector<8x1xf32>
    %312 = vector.broadcast %311 : vector<8x1xf32> to vector<8x8xf32>
    %313 = arith.mulf %310, %312 : vector<8x8xf32>
    %c25 = arith.constant 25 : index
    %c0_209 = arith.constant 0 : index
    %c0_210 = arith.constant 0 : index
    %314 = vector.load %arg5[%c25, %c0_209, %c0_210] : memref<32x8x32xf32, #tpu.memory_space<vmem>>, vector<1x8x32xf32>
    %315 = vector.shape_cast %314 : vector<1x8x32xf32> to vector<8x32xf32>
    %cst_211 = arith.constant dense<0.000000e+00> : vector<8x32xf32>
    %316 = tpu.matmul %313, %315, %cst_211 {dimension_numbers = #tpu.dot_dimension_numbers<[1], [0], [0], [1], [0, 0, 1, 1], [], []>} : vector<8x8xf32>, vector<8x32xf32>, vector<8x32xf32> -> vector<8x32xf32>
    %c0_212 = arith.constant 0 : index
    %c0_213 = arith.constant 0 : index
    %317 = vector.load %arg7[%c0_212, %c0_213] : memref<8x32xf32, #tpu.memory_space<vmem>>, vector<8x32xf32>
    %cst_214 = arith.constant 0.000000e+00 : f32
    %318 = vector.broadcast %cst_214 : f32 to vector<8x32xf32>
    %319 = arith.maximumf %316, %318 : vector<8x32xf32>
    %320 = arith.addf %317, %319 : vector<8x32xf32>
    %c0_215 = arith.constant 0 : index
    %c0_216 = arith.constant 0 : index
    %321 = vector.load %arg7[%c0_215, %c0_216] : memref<8x32xf32, #tpu.memory_space<vmem>>, vector<8x32xf32>
    tpu.vector_store %arg7[%c0_215, %c0_216], %320 {strides = array<i32>} : memref<8x32xf32, #tpu.memory_space<vmem>>, vector<8x32xf32>,
    %322 = vector.extract_strided_slice %7 {offsets = [0, 208], sizes = [8, 8], strides = [1, 1]} : vector<8x256xf32> to vector<8x8xf32>
    %323 = vector.extract_strided_slice %9 {offsets = [0, 26], sizes = [8, 1], strides = [1, 1]} : vector<8x32xf32> to vector<8x1xf32>
    %324 = vector.broadcast %323 : vector<8x1xf32> to vector<8x8xf32>
    %325 = arith.mulf %322, %324 : vector<8x8xf32>
    %c26 = arith.constant 26 : index
    %c0_217 = arith.constant 0 : index
    %c0_218 = arith.constant 0 : index
    %326 = vector.load %arg5[%c26, %c0_217, %c0_218] : memref<32x8x32xf32, #tpu.memory_space<vmem>>, vector<1x8x32xf32>
    %327 = vector.shape_cast %326 : vector<1x8x32xf32> to vector<8x32xf32>
    %cst_219 = arith.constant dense<0.000000e+00> : vector<8x32xf32>
    %328 = tpu.matmul %325, %327, %cst_219 {dimension_numbers = #tpu.dot_dimension_numbers<[1], [0], [0], [1], [0, 0, 1, 1], [], []>} : vector<8x8xf32>, vector<8x32xf32>, vector<8x32xf32> -> vector<8x32xf32>
    %c0_220 = arith.constant 0 : index
    %c0_221 = arith.constant 0 : index
    %329 = vector.load %arg7[%c0_220, %c0_221] : memref<8x32xf32, #tpu.memory_space<vmem>>, vector<8x32xf32>
    %cst_222 = arith.constant 0.000000e+00 : f32
    %330 = vector.broadcast %cst_222 : f32 to vector<8x32xf32>
    %331 = arith.maximumf %328, %330 : vector<8x32xf32>
    %332 = arith.addf %329, %331 : vector<8x32xf32>
    %c0_223 = arith.constant 0 : index
    %c0_224 = arith.constant 0 : index
    %333 = vector.load %arg7[%c0_223, %c0_224] : memref<8x32xf32, #tpu.memory_space<vmem>>, vector<8x32xf32>
    tpu.vector_store %arg7[%c0_223, %c0_224], %332 {strides = array<i32>} : memref<8x32xf32, #tpu.memory_space<vmem>>, vector<8x32xf32>,
    %334 = vector.extract_strided_slice %7 {offsets = [0, 216], sizes = [8, 8], strides = [1, 1]} : vector<8x256xf32> to vector<8x8xf32>
    %335 = vector.extract_strided_slice %9 {offsets = [0, 27], sizes = [8, 1], strides = [1, 1]} : vector<8x32xf32> to vector<8x1xf32>
    %336 = vector.broadcast %335 : vector<8x1xf32> to vector<8x8xf32>
    %337 = arith.mulf %334, %336 : vector<8x8xf32>
    %c27 = arith.constant 27 : index
    %c0_225 = arith.constant 0 : index
    %c0_226 = arith.constant 0 : index
    %338 = vector.load %arg5[%c27, %c0_225, %c0_226] : memref<32x8x32xf32, #tpu.memory_space<vmem>>, vector<1x8x32xf32>
    %339 = vector.shape_cast %338 : vector<1x8x32xf32> to vector<8x32xf32>
    %cst_227 = arith.constant dense<0.000000e+00> : vector<8x32xf32>
    %340 = tpu.matmul %337, %339, %cst_227 {dimension_numbers = #tpu.dot_dimension_numbers<[1], [0], [0], [1], [0, 0, 1, 1], [], []>} : vector<8x8xf32>, vector<8x32xf32>, vector<8x32xf32> -> vector<8x32xf32>
    %c0_228 = arith.constant 0 : index
    %c0_229 = arith.constant 0 : index
    %341 = vector.load %arg7[%c0_228, %c0_229] : memref<8x32xf32, #tpu.memory_space<vmem>>, vector<8x32xf32>
    %cst_230 = arith.constant 0.000000e+00 : f32
    %342 = vector.broadcast %cst_230 : f32 to vector<8x32xf32>
    %343 = arith.maximumf %340, %342 : vector<8x32xf32>
    %344 = arith.addf %341, %343 : vector<8x32xf32>
    %c0_231 = arith.constant 0 : index
    %c0_232 = arith.constant 0 : index
    %345 = vector.load %arg7[%c0_231, %c0_232] : memref<8x32xf32, #tpu.memory_space<vmem>>, vector<8x32xf32>
    tpu.vector_store %arg7[%c0_231, %c0_232], %344 {strides = array<i32>} : memref<8x32xf32, #tpu.memory_space<vmem>>, vector<8x32xf32>,
    %346 = vector.extract_strided_slice %7 {offsets = [0, 224], sizes = [8, 8], strides = [1, 1]} : vector<8x256xf32> to vector<8x8xf32>
    %347 = vector.extract_strided_slice %9 {offsets = [0, 28], sizes = [8, 1], strides = [1, 1]} : vector<8x32xf32> to vector<8x1xf32>
    %348 = vector.broadcast %347 : vector<8x1xf32> to vector<8x8xf32>
    %349 = arith.mulf %346, %348 : vector<8x8xf32>
    %c28 = arith.constant 28 : index
    %c0_233 = arith.constant 0 : index
    %c0_234 = arith.constant 0 : index
    %350 = vector.load %arg5[%c28, %c0_233, %c0_234] : memref<32x8x32xf32, #tpu.memory_space<vmem>>, vector<1x8x32xf32>
    %351 = vector.shape_cast %350 : vector<1x8x32xf32> to vector<8x32xf32>
    %cst_235 = arith.constant dense<0.000000e+00> : vector<8x32xf32>
    %352 = tpu.matmul %349, %351, %cst_235 {dimension_numbers = #tpu.dot_dimension_numbers<[1], [0], [0], [1], [0, 0, 1, 1], [], []>} : vector<8x8xf32>, vector<8x32xf32>, vector<8x32xf32> -> vector<8x32xf32>
    %c0_236 = arith.constant 0 : index
    %c0_237 = arith.constant 0 : index
    %353 = vector.load %arg7[%c0_236, %c0_237] : memref<8x32xf32, #tpu.memory_space<vmem>>, vector<8x32xf32>
    %cst_238 = arith.constant 0.000000e+00 : f32
    %354 = vector.broadcast %cst_238 : f32 to vector<8x32xf32>
    %355 = arith.maximumf %352, %354 : vector<8x32xf32>
    %356 = arith.addf %353, %355 : vector<8x32xf32>
    %c0_239 = arith.constant 0 : index
    %c0_240 = arith.constant 0 : index
    %357 = vector.load %arg7[%c0_239, %c0_240] : memref<8x32xf32, #tpu.memory_space<vmem>>, vector<8x32xf32>
    tpu.vector_store %arg7[%c0_239, %c0_240], %356 {strides = array<i32>} : memref<8x32xf32, #tpu.memory_space<vmem>>, vector<8x32xf32>,
    %358 = vector.extract_strided_slice %7 {offsets = [0, 232], sizes = [8, 8], strides = [1, 1]} : vector<8x256xf32> to vector<8x8xf32>
    %359 = vector.extract_strided_slice %9 {offsets = [0, 29], sizes = [8, 1], strides = [1, 1]} : vector<8x32xf32> to vector<8x1xf32>
    %360 = vector.broadcast %359 : vector<8x1xf32> to vector<8x8xf32>
    %361 = arith.mulf %358, %360 : vector<8x8xf32>
    %c29 = arith.constant 29 : index
    %c0_241 = arith.constant 0 : index
    %c0_242 = arith.constant 0 : index
    %362 = vector.load %arg5[%c29, %c0_241, %c0_242] : memref<32x8x32xf32, #tpu.memory_space<vmem>>, vector<1x8x32xf32>
    %363 = vector.shape_cast %362 : vector<1x8x32xf32> to vector<8x32xf32>
    %cst_243 = arith.constant dense<0.000000e+00> : vector<8x32xf32>
    %364 = tpu.matmul %361, %363, %cst_243 {dimension_numbers = #tpu.dot_dimension_numbers<[1], [0], [0], [1], [0, 0, 1, 1], [], []>} : vector<8x8xf32>, vector<8x32xf32>, vector<8x32xf32> -> vector<8x32xf32>
    %c0_244 = arith.constant 0 : index
    %c0_245 = arith.constant 0 : index
    %365 = vector.load %arg7[%c0_244, %c0_245] : memref<8x32xf32, #tpu.memory_space<vmem>>, vector<8x32xf32>
    %cst_246 = arith.constant 0.000000e+00 : f32
    %366 = vector.broadcast %cst_246 : f32 to vector<8x32xf32>
    %367 = arith.maximumf %364, %366 : vector<8x32xf32>
    %368 = arith.addf %365, %367 : vector<8x32xf32>
    %c0_247 = arith.constant 0 : index
    %c0_248 = arith.constant 0 : index
    %369 = vector.load %arg7[%c0_247, %c0_248] : memref<8x32xf32, #tpu.memory_space<vmem>>, vector<8x32xf32>
    tpu.vector_store %arg7[%c0_247, %c0_248], %368 {strides = array<i32>} : memref<8x32xf32, #tpu.memory_space<vmem>>, vector<8x32xf32>,
    %370 = vector.extract_strided_slice %7 {offsets = [0, 240], sizes = [8, 8], strides = [1, 1]} : vector<8x256xf32> to vector<8x8xf32>
    %371 = vector.extract_strided_slice %9 {offsets = [0, 30], sizes = [8, 1], strides = [1, 1]} : vector<8x32xf32> to vector<8x1xf32>
    %372 = vector.broadcast %371 : vector<8x1xf32> to vector<8x8xf32>
    %373 = arith.mulf %370, %372 : vector<8x8xf32>
    %c30 = arith.constant 30 : index
    %c0_249 = arith.constant 0 : index
    %c0_250 = arith.constant 0 : index
    %374 = vector.load %arg5[%c30, %c0_249, %c0_250] : memref<32x8x32xf32, #tpu.memory_space<vmem>>, vector<1x8x32xf32>
    %375 = vector.shape_cast %374 : vector<1x8x32xf32> to vector<8x32xf32>
    %cst_251 = arith.constant dense<0.000000e+00> : vector<8x32xf32>
    %376 = tpu.matmul %373, %375, %cst_251 {dimension_numbers = #tpu.dot_dimension_numbers<[1], [0], [0], [1], [0, 0, 1, 1], [], []>} : vector<8x8xf32>, vector<8x32xf32>, vector<8x32xf32> -> vector<8x32xf32>
    %c0_252 = arith.constant 0 : index
    %c0_253 = arith.constant 0 : index
    %377 = vector.load %arg7[%c0_252, %c0_253] : memref<8x32xf32, #tpu.memory_space<vmem>>, vector<8x32xf32>
    %cst_254 = arith.constant 0.000000e+00 : f32
    %378 = vector.broadcast %cst_254 : f32 to vector<8x32xf32>
    %379 = arith.maximumf %376, %378 : vector<8x32xf32>
    %380 = arith.addf %377, %379 : vector<8x32xf32>
    %c0_255 = arith.constant 0 : index
    %c0_256 = arith.constant 0 : index
    %381 = vector.load %arg7[%c0_255, %c0_256] : memref<8x32xf32, #tpu.memory_space<vmem>>, vector<8x32xf32>
    tpu.vector_store %arg7[%c0_255, %c0_256], %380 {strides = array<i32>} : memref<8x32xf32, #tpu.memory_space<vmem>>, vector<8x32xf32>,
    %382 = vector.extract_strided_slice %7 {offsets = [0, 248], sizes = [8, 8], strides = [1, 1]} : vector<8x256xf32> to vector<8x8xf32>
    %383 = vector.extract_strided_slice %9 {offsets = [0, 31], sizes = [8, 1], strides = [1, 1]} : vector<8x32xf32> to vector<8x1xf32>
    %384 = vector.broadcast %383 : vector<8x1xf32> to vector<8x8xf32>
    %385 = arith.mulf %382, %384 : vector<8x8xf32>
    %c31 = arith.constant 31 : index
    %c0_257 = arith.constant 0 : index
    %c0_258 = arith.constant 0 : index
    %386 = vector.load %arg5[%c31, %c0_257, %c0_258] : memref<32x8x32xf32, #tpu.memory_space<vmem>>, vector<1x8x32xf32>
    %387 = vector.shape_cast %386 : vector<1x8x32xf32> to vector<8x32xf32>
    %cst_259 = arith.constant dense<0.000000e+00> : vector<8x32xf32>
    %388 = tpu.matmul %385, %387, %cst_259 {dimension_numbers = #tpu.dot_dimension_numbers<[1], [0], [0], [1], [0, 0, 1, 1], [], []>} : vector<8x8xf32>, vector<8x32xf32>, vector<8x32xf32> -> vector<8x32xf32>
    %c0_260 = arith.constant 0 : index
    %c0_261 = arith.constant 0 : index
    %389 = vector.load %arg7[%c0_260, %c0_261] : memref<8x32xf32, #tpu.memory_space<vmem>>, vector<8x32xf32>
    %cst_262 = arith.constant 0.000000e+00 : f32
    %390 = vector.broadcast %cst_262 : f32 to vector<8x32xf32>
    %391 = arith.maximumf %388, %390 : vector<8x32xf32>
    %392 = arith.addf %389, %391 : vector<8x32xf32>
    %c0_263 = arith.constant 0 : index
    %c0_264 = arith.constant 0 : index
    %393 = vector.load %arg7[%c0_263, %c0_264] : memref<8x32xf32, #tpu.memory_space<vmem>>, vector<8x32xf32>
    tpu.vector_store %arg7[%c0_263, %c0_264], %392 {strides = array<i32>} : memref<8x32xf32, #tpu.memory_space<vmem>>, vector<8x32xf32>,
    %c0_i32_265 = arith.constant 0 : i32
    %394 = arith.cmpi eq, %arg1, %c0_i32_265 : i32
    %395 = arith.extui %394 : i1 to i32
    %c0_i32_266 = arith.constant 0 : i32
    %396 = arith.cmpi ne, %395, %c0_i32_266 : i32
    scf.if %396 {
      %c0_267 = arith.constant 0 : index
      %c0_268 = arith.constant 0 : index
      %397 = vector.load %arg7[%c0_267, %c0_268] : memref<8x32xf32, #tpu.memory_space<vmem>>, vector<8x32xf32>
      %c0_269 = arith.constant 0 : index
      %c0_270 = arith.constant 0 : index
      %398 = vector.load %arg6[%c0_269, %c0_270] : memref<8x32xf32, #tpu.memory_space<vmem>>, vector<8x32xf32>
      tpu.vector_store %arg6[%c0_269, %c0_270], %397 {strides = array<i32>} : memref<8x32xf32, #tpu.memory_space<vmem>>, vector<8x32xf32>,
    } else {
    }
    return
  }
  func.func @transform_0(%arg0: i32, %arg1: i32) -> (i32, i32) {
    %c0_i32 = arith.constant 0 : i32
    %c0_i32_0 = arith.constant 0 : i32
    return %arg0, %c0_i32 : i32, i32
  }
  func.func @transform_1(%arg0: i32, %arg1: i32) -> (i32, i32) {
    %c0_i32 = arith.constant 0 : i32
    %c0_i32_0 = arith.constant 0 : i32
    return %c0_i32, %arg1 : i32, i32
  }
  func.func @transform_2(%arg0: i32, %arg1: i32) -> (i32, i32, i32) {
    %c0_i32 = arith.constant 0 : i32
    %c0_i32_0 = arith.constant 0 : i32
    return %arg1, %arg0, %c0_i32 : i32, i32, i32
  }
  func.func @transform_3(%arg0: i32, %arg1: i32) -> (i32, i32, i32) {
    %c0_i32 = arith.constant 0 : i32
    %c0_i32_0 = arith.constant 0 : i32
    %c0_i32_1 = arith.constant 0 : i32
    return %arg1, %c0_i32, %c0_i32_0 : i32, i32, i32
  }
  func.func @transform_4(%arg0: i32, %arg1: i32) -> (i32, i32) {
    %c0_i32 = arith.constant 0 : i32
    %c0_i32_0 = arith.constant 0 : i32
    return %arg0, %c0_i32 : i32, i32
  }
}

</mosaic_0001>

<bundles_post_ra>
// kernel: tpu_custom_call.1
= control target key start
LH: loop header
LB: loop body
LE: loop exit
PB: predicated region body
PF: predicated region fallthrough
CT: control target
= control target key end

     0   :  { %9 = vsyncpa [#allocation4], 0  ;;  %s1830_s0 = inlined_call_operand.hbm [shape: f32[8,32], index: 0, kind: input, shape index: {}]   ;;  %s1831_s1 = inlined_call_operand.hbm [shape: f32[32,256], index: 1, kind: input, shape index: {}]   ;;  %s1832_s2 = inlined_call_operand.hbm [shape: f32[1,8,32], index: 2, kind: input, shape index: {}]   ;;  %s1833_s3 = inlined_call_operand.hbm [shape: f32[32,8,32], index: 3, kind: input, shape index: {}]   ;;  %s1834_s4 = inlined_call_operand.hbm [shape: f32[8,32], index: 4, kind: output, shape index: {}]  }
   0x1   :  { %10 = vsyncpa [#allocation7], 0 }
   0x2   :  { %11 = vsyncpa [#allocation10], 0  ;;  %s28_s17 = sshll.u32 %s1831_s1, 4  ;;  %s29_s17 = int_to_ptr.hbm [resolvable:$true] %s28_s17 }
   0x3   :  { %12 = vsyncpa [#allocation5], 0  ;;  %s1561_s18 = smov [#allocation6]   ;;  %s18_s22 = sshll.u32 %s1830_s0, 4  ;;  %s19_s22 = int_to_ptr.hbm [resolvable:$true] %s18_s22 }
   0x4   :  { %s30_s19 = sshll.u32 %s1561_s18, 4  ;;  %s1562_s23 = smov 256   ;;  %s31_s19 = int_to_ptr.vmem [resolvable:$true] %s30_s19 }
   0x5   :  { %s1563_s24 = smov 16   ;;  %s1564_s25 = smov [#allocation3]  }
   0x6   :  { %36 = dma.hbm_to_vmem [thread:$0]  %s29_s17, 1024, %s31_s19, [#allocation7], %s1562_s23, %s1562_s23, %s1563_s24  }
   0x7   :  { %s20_s26 = sshll.u32 %s1564_s25, 4  ;;  %s42_s1 = sshll.u32 %s1832_s2, 4  ;;  %s21_s26 = int_to_ptr.vmem [resolvable:$true] %s20_s26  ;;  %s43_s1 = int_to_ptr.hbm [resolvable:$true] %s42_s1 }
   0x8   :  { %23 = dma.hbm_to_vmem [thread:$0]  %s19_s22, 128, %s21_s26, [#allocation4]  }
   0x9   :  { %s52_s5 = sshll.u32 %s1833_s3, 4  ;;  %s1565_s6 = smov [#allocation8]   ;;  %s53_s5 = int_to_ptr.hbm [resolvable:$true] %s52_s5 }
   0xa   :  { %s44_s0 = sshll.u32 %s1565_s6, 4  ;;  %s1566_s7 = smov [#allocation9]   ;;  %s45_s0 = int_to_ptr.vmem [resolvable:$true] %s44_s0 }
   0xb   :  { %47 = dma.hbm_to_vmem [thread:$0]  %s43_s1, 128, %s45_s0, [#allocation7]  }
   0xc   :  { %s54_s8 = sshll.u32 %s1566_s7, 4  ;;  %s1567_s9 = smov 128   ;;  %s55_s8 = int_to_ptr.vmem [resolvable:$true] %s54_s8 }
   0xd   :  { %s1568_s10 = smov 8  }
   0xe   :  { %60 = dma.hbm_to_vmem [thread:$0]  %s53_s5, 4096, %s55_s8, [#allocation10], %s1567_s9, %s1567_s9, %s1568_s10  }
   0xf   :  { %1553 = dma.done.wait [#allocation4], 128  }
  0x10   :  { %1554 = vsyncadd [#allocation4], 4294967168 }
  0x11   :  { %1555 = dma.done.wait [#allocation7], 1152  }
  0x12   :  { %1556 = vsyncadd [#allocation7], 4294966144 }
  0x13   :  { %1557 = dma.done.wait [#allocation10], 4096  }
  0x14   :  { %1558 = vsyncadd [#allocation10], 4294963200  ;;  %v1569_v0 = vmov 3   ;;  %v1570_v1 = vmov 1   ;;  %v1571_v2 = vmov 4   ;;  %v1655_v3 = vld [vmem:[#allocation8] sm:$0xff] }
  0x15   :  { %1403 = vset.pattern.permute.xlu1 %v1569_v0  ;;  %1401 = vset.pattern.permute.xlu0 %v1570_v1  ;;  %v90_v4 = vld [vmem:[#allocation6 + $0x30] sm:$0xff]  ;;  %v88_v5 = vld [vmem:[#allocation6 + $0x20] sm:$0xff]  ;;  %vm81_vm0 = vcmask 261120   ;;  %v1660_v8 = vld [vmem:[#allocation3] sm:$0xff]  ;;  %v1572_v9 = vmov 0   ;;  %v1573_v10 = vmov 2  }
  0x16   :  { %1405 = vset.pattern.permute.xlu2 %v1571_v2  ;;  %247 = vperm.xlu1 %1403, %v1655_v3   ;;  %v86_v6 = vld [vmem:[#allocation6 + $0x10] sm:$0xff]  ;;  %v84_v7 = vld [vmem:[#allocation6] sm:$0xff]  ;;  %v1574_v11 = vmov 5   ;;  %v1575_v12 = vmov 7   ;;  %v145_v13 = vld [vmem:[#allocation9] sm:$0xff]  ;;  %v1576_v14 = vmov 6  }
  0x17   :  { %108 = vmatpush.msra.mxu0 %v90_v4  ;;  %175 = vperm.xlu0 %1401, %v1655_v3   ;;  %v1577_v15 = vmov 8   ;;  %v1578_v16 = vmov 11   ;;  %vm146_vm1 = vcmask 64512   ;;  %s1579_s2 = smov 96   ;;  %s1580_s3 = smov 112   ;;  %v1584_v31 = vmov 9  }
  0x18   :  { %283 = vperm.xlu2 %1405, %v1655_v3   ;;  %165 = vmatpush.msra.mxu2 %v145_v13  ;;  %s1581_s11 = smov 120   ;;  %s1582_s12 = smov 88   ;;  %v180_v32 = vld [vmem:[#allocation9 + $0x8] sm:$0xff]  ;;  %v1585_v33 = vmov 10   ;;  %v1587_v36 = vmov 13   ;;  %v1588_v37 = vmov 14  }
  0x19   :  { %109 = vmatpush.msra.mxu0 %v88_v5  ;;  %s1583_s13 = smov 104   ;;  %201 = vmatpush.msra.mxu3 %v180_v32  ;;  %s1586_s14 = smov 72   ;;  %v252_v38 = vld [vmem:[#allocation9 + $0x18] sm:$0xff]  ;;  %v91_v39 = vld [vmem:[#allocation6 + $0x38] sm:$0xff]  ;;  %v1589_v40 = vmov 12   ;;  %v89_v41 = vld [vmem:[#allocation6 + $0x28] sm:$0xff] }
  0x1a   :  { %128 = vmatpush.msra.mxu1 %v91_v39  ;;  %v87_v42 = vld [vmem:[#allocation6 + $0x18] sm:$0xff]  ;;  %v288_v44 = vld [vmem:[#allocation9 + $0x20] sm:$0xff]  ;;  %v324_v46 = vld [vmem:[#allocation9 + $0x28] sm:$0xff]  ;;  %v1590_v48 = vmov 0.0   ;;  %s1591_s15 = smov 80   ;;  %v1592_v53 = vmov 15  }
  0x1b   :  { %110 = vmatpush.msra.mxu0 %v86_v6  ;;  %273 = vmatpush.msrb.mxu3 %v252_v38  ;;  %v216_v43 = vld [vmem:[#allocation9 + $0x10] sm:$0xff]  ;;  %v85_v45 = vld [vmem:[#allocation6 + $0x8] sm:$0xff]  ;;  %82 = vst.msk [vmem:[#allocation2] sm:$0xff] %vm81_vm0, %v1590_v48  ;;  %v396_v50 = vld [vmem:[#allocation9 + $0x38] sm:$0xff]  ;;  %s1593_s16 = smov 64   ;;  %s1594_s17 = smov 48  }
  0x1c   :  { %129 = vmatpush.msra.mxu1 %v89_v41  ;;  %237 = vmatpush.msrb.mxu2 %v216_v43  ;;  %s1595_s18 = smov 40   ;;  %s1596_s19 = smov 56   ;;  %v540_v13 = vld [vmem:[#allocation9 + $0x58] sm:$0xff]  ;;  %v648_v32 = vld [vmem:[#allocation9 + $0x70] sm:$0xff] }
  0x1d   :  { %111 = vmatpush.msra.mxu0 %v84_v7  ;;  %s1597_s20 = smov 24   ;;  %s1602_s21 = smov 32  }
  0x1e   :  { %1312 = vmatmul.msk.f32.vlgmr.msra.gmra.mxu0 %vm81_vm0, %v1660_v8  ;;  %1404 = vset.pattern.permute.xlu1 %v1572_v9  ;;  %v1598_v9 = vmov 17   ;;  %s1615_s22 = smov [#allocation11]   ;;  %s1300_s26 = sshll.u32 %s1834_s4, 4  ;;  %s1301_s26 = int_to_ptr.hbm [resolvable:$true] %s1300_s26 }
  0x1f   :  { %141 = vperm.xlu1 %1404, %v1655_v3   ;;  %1402 = vset.pattern.permute.xlu0 %v1573_v10  ;;  %s1298_s23 = sshll.u32 %s1615_s22, 4  ;;  %s1299_s23 = int_to_ptr.vmem [resolvable:$true] %s1298_s23 }
  0x20   :  { %211 = vperm.xlu0 %1402, %v1655_v3   ;;  %1407 = vset.pattern.permute.xlu2 %v1576_v14  ;;  %v1599_v14 = vmov 18  }
  0x21   :  { %309 = vmatpush.msrb.mxu0 %v288_v44  ;;  %130 = vmatpush.msra.mxu1 %v87_v42 }
  0x22   :  { %v170_v4 = vld [vmem:[#allocation2] sm:$0xff] }
  0x23   :  { %131 = vmatpush.msra.mxu1 %v85_v45 }
  0x24   :  { %1313 = vmatmul.msk.f32.vlgmr.msra.gmra.mxu1 %vm81_vm0, %v1660_v8 }
  0x25   :  { %345 = vmatpush.msrb.mxu1 %v324_v46 }
  0x27   :  { %1406 = vset.pattern.permute.xlu1 %v1574_v11 }
  0x28   :  { %319 = vperm.xlu1 %1406, %v1655_v3   ;;  %1409 = vset.pattern.permute.xlu0 %v1577_v15  ;;  %v432_v15 = vld [vmem:[#allocation9 + $0x40] sm:$0xff] }
  0x29   :  { %453 = vmatpush.msra.mxu0 %v432_v15 }
  0x30   :  { %1408 = vset.pattern.permute.xlu1 %v1575_v12  ;;  %v360_v12 = vld [vmem:[#allocation9 + $0x30] sm:$0xff] }
  0x31   :  { %391 = vperm.xlu1 %1408, %v1655_v3  }
  0x39   :  { %1412 = vset.pattern.permute.xlu1 %v1578_v16  ;;  %v504_v16 = vld [vmem:[#allocation9 + $0x50] sm:$0xff] }
  0x72   :  { %v284_v20 = vpop.permute.xlu2 %283 }
  0x88   :  { %v248_v17 = vpop.permute.xlu1 %247 }
  0x89   :  { %v176_v18 = vpop.permute.xlu0 %175 }
  0x91   :  { %v142_v19 = vpop.permute.xlu1 %141 }
  0x92   :  { %v212_v22 = vpop.permute.xlu0 %211 }
  0x9a   :  { %v320_v28 = vpop.permute.xlu1 %319 }
  0x9b   :  { %v113_v21 = vpop.f32.mrf.mxu0 }
  0x9c   :  { %v1668_v23 = vmax.f32 %v113_v21, 0.0 }
  0x9e   :  { %v286_v24 = vmul.f32 %v284_v20, %v1668_v23  ;;  %v214_v25 = vmul.f32 %v212_v22, %v1668_v23  ;;  %v178_v26 = vmul.f32 %v176_v18, %v1668_v23  ;;  %v144_v27 = vmul.f32 %v142_v19, %v1668_v23  ;;  %v468_v18 = vld [vmem:[#allocation9 + $0x48] sm:$0xff] }
  0x9f   :  { %v322_v29 = vmul.f32 %v320_v28, %v1668_v23  ;;  %v250_v30 = vmul.f32 %v248_v17, %v1668_v23  ;;  %v1600_v17 = vmov 19   ;;  %489 = vmatpush.msra.mxu1 %v468_v18  ;;  %v1601_v20 = vmov 16  }
  0xa0   :  { %290 = vrot.lane.b32.xlu1 %v286_v24, %s1579_s2  ;;  %218 = vrot.lane.b32.xlu0 %v214_v25, %s1580_s3  ;;  %v612_v24 = vld [vmem:[#allocation9 + $0x68] sm:$0xff]  ;;  %v1609_v18 = vmov 27  }
  0xa1   :  { %182 = vrot.lane.b32.xlu2 %v178_v26, %s1581_s11  ;;  %1314 = vmatmul.msk.f32.vlgmr.msra.gmra.mxu2 %vm146_vm1, %v144_v27  ;;  %v133_v48 = vpop.f32.mrf.mxu1 }
  0xa2   :  { %381 = vmatpush.msra.mxu2 %v360_v12 }
  0xa3   :  { %v392_v34 = vpop.permute.xlu1 %391 }
  0xa4   :  { %v394_v35 = vmul.f32 %v392_v34, %v1668_v23  ;;  %v1604_v34 = vmov 20  }
  0xa8   :  { %326 = vrot.lane.b32.xlu1 %v322_v29, %s1582_s12  ;;  %427 = vperm.xlu0 %1409, %v1655_v3  }
  0xa9   :  { %355 = vperm.xlu2 %1407, %v1655_v3  }
  0xb0   :  { %535 = vperm.xlu1 %1412, %v1655_v3   ;;  %1413 = vset.pattern.permute.xlu0 %v1589_v40  ;;  %v1605_v40 = vmov 23  }
  0xb1   :  { %254 = vrot.lane.b32.xlu2 %v250_v30, %s1583_s13  ;;  %v1603_v30 = vmov 21  }
  0xb2   :  { %1410 = vset.pattern.permute.xlu2 %v1584_v31 }
  0xb8   :  { %1416 = vset.pattern.permute.xlu1 %v1592_v53 }
  0xb9   :  { %463 = vperm.xlu2 %1410, %v1655_v3  }
  0xc1   :  { %1411 = vset.pattern.permute.xlu2 %v1585_v33 }
  0xc2   :  { %499 = vperm.xlu2 %1411, %v1655_v3  }
  0xca   :  { %398 = vrot.lane.b32.xlu2 %v394_v35, %s1586_s14 }
  0xcb   :  { %1414 = vset.pattern.permute.xlu2 %v1587_v36 }
  0xd2   :  { %607 = vperm.xlu2 %1414, %v1655_v3  }
  0xda   :  { %1415 = vset.pattern.permute.xlu2 %v1588_v37 }
  0xdb   :  { %643 = vperm.xlu2 %1415, %v1655_v3  }
  0xe3   :  { %1419 = vset.pattern.permute.xlu2 %v1600_v17 }
  0xfb   :  { %v183_v47 = vpop.permute.xlu2 %182 }
  0xfc   :  { %1315 = vmatmul.msk.f32.vlgmr.msra.gmra.mxu3 %vm146_vm1, %v183_v47 }
  0xfd   :  { %417 = vmatpush.msra.mxu3 %v396_v50 }
 0x103   :  { %v356_v49 = vpop.permute.xlu2 %355 }
 0x104   :  { %v358_v51 = vmul.f32 %v356_v49, %v1668_v23  ;;  %v1736_v49 = vmax.f32 %v133_v48, 0.0 }
 0x106   :  { %362 = vrot.lane.b32.xlu0 %v358_v51, %s1591_s15 }
 0x10b   :  { %v255_v52 = vpop.permute.xlu2 %254 }
 0x10c   :  { %1317 = vmatmul.msk.f32.vlgmr.msrb.gmra.mxu3 %vm146_vm1, %v255_v52 }
 0x10d   :  { %561 = vmatpush.msrb.mxu3 %v540_v13 }
 0x10e   :  { %571 = vperm.xlu0 %1413, %v1655_v3  }
 0x112   :  { %v291_v54 = vpop.permute.xlu1 %290  ;;  %v219_v55 = vpop.permute.xlu0 %218 }
 0x113   :  { %v464_v56 = vpop.permute.xlu2 %463  ;;  %1316 = vmatmul.msk.f32.vlgmr.msrb.gmra.mxu2 %vm146_vm1, %v219_v55  ;;  %1318 = vmatmul.msk.f32.vlgmr.msrb.gmra.mxu0 %vm146_vm1, %v291_v54  ;;  %v576_v55 = vld [vmem:[#allocation9 + $0x60] sm:$0xff] }
 0x114   :  { %v466_v0 = vmul.f32 %v464_v56, %v1668_v23  ;;  %525 = vmatpush.msrb.mxu2 %v504_v16  ;;  %597 = vmatpush.msrb.mxu0 %v576_v55 }
 0x116   :  { %1418 = vset.pattern.permute.xlu0 %v1599_v14 }
 0x11a   :  { %v327_v57 = vpop.permute.xlu1 %326  ;;  %v428_v58 = vpop.permute.xlu0 %427 }
 0x11b   :  { %v430_v59 = vmul.f32 %v428_v58, %v1668_v23  ;;  %1319 = vmatmul.msk.f32.vlgmr.msrb.gmra.mxu1 %vm146_vm1, %v327_v57  ;;  %v1606_v58 = vmov 22  }
 0x11c   :  { %v500_v60 = vpop.permute.xlu2 %499  ;;  %633 = vmatpush.msrb.mxu1 %v612_v24 }
 0x11d   :  { %v502_v61 = vmul.f32 %v500_v60, %v1668_v23  ;;  %434 = vrot.lane.b32.xlu1 %v430_v59, %s1593_s16 }
 0x11f   :  { %506 = vrot.lane.b32.xlu0 %v502_v61, %s1594_s17 }
 0x122   :  { %v536_v62 = vpop.permute.xlu1 %535 }
 0x123   :  { %v538_v63 = vmul.f32 %v536_v62, %v1668_v23 }
 0x124   :  { %v399_v1 = vpop.permute.xlu2 %398  ;;  %v167_v2 = vpop.f32.mrf.mxu2 }
 0x125   :  { %v171_v5 = vmax.f32 %v167_v2, 0.0  ;;  %1321 = vmatmul.msk.f32.vlgmr.msra.gmra.mxu3 %vm146_vm1, %v399_v1  ;;  %542 = vrot.lane.b32.xlu2 %v538_v63, %s1595_s18  ;;  %v1607_v1 = vmov 24   ;;  %v1608_v2 = vmov 26  }
 0x126   :  { %470 = vrot.lane.b32.xlu1 %v466_v0, %s1596_s19  ;;  %v720_v0 = vld [vmem:[#allocation9 + $0x80] sm:$0xff] }
 0x127   :  { %v172_v6 = vadd.f32 %v171_v5, %v170_v4  ;;  %v684_v4 = vld [vmem:[#allocation9 + $0x78] sm:$0xff] }
 0x128   :  { %705 = vmatpush.msra.mxu3 %v684_v4 }
 0x129   :  { %173 = vst.msk [vmem:[#allocation2] sm:$0xff] %vm81_vm0, %v172_v6 }
 0x12c   :  { %v608_v7 = vpop.permute.xlu2 %607 }
 0x12d   :  { %v610_v8 = vmul.f32 %v608_v7, %v1668_v23 }
 0x12e   :  { %679 = vperm.xlu1 %1416, %v1655_v3  }
 0x12f   :  { %614 = vrot.lane.b32.xlu2 %v610_v8, %s1597_s20 }
 0x130   :  { %v206_v27 = vld [vmem:[#allocation2] sm:$0xff] }
 0x135   :  { %v644_v10 = vpop.permute.xlu2 %643 }
 0x136   :  { %1417 = vset.pattern.permute.xlu1 %v1598_v9  ;;  %v646_v11 = vmul.f32 %v644_v10, %v1668_v23 }
 0x137   :  { %749 = vperm.xlu1 %1417, %v1655_v3   ;;  %821 = vperm.xlu2 %1419, %v1655_v3  }
 0x13f   :  { %650 = vrot.lane.b32.xlu1 %v646_v11, %s1563_s24  ;;  %1420 = vset.pattern.permute.xlu2 %v1601_v20 }
 0x140   :  { %715 = vperm.xlu2 %1420, %v1655_v3   ;;  %1422 = vset.pattern.permute.xlu1 %v1603_v30 }
 0x148   :  { %1425 = vset.pattern.permute.xlu2 %v1607_v1 }
 0x178   :  { %v363_v19 = vpop.permute.xlu0 %362 }
 0x179   :  { %1320 = vmatmul.msk.f32.vlgmr.msra.gmra.mxu2 %vm146_vm1, %v363_v19 }
 0x17a   :  { %669 = vmatpush.msra.mxu2 %v648_v32 }
 0x17f   :  { %v203_v21 = vpop.f32.mrf.mxu3  ;;  %v543_v22 = vpop.permute.xlu2 %542 }
 0x180   :  { %v207_v25 = vmax.f32 %v203_v21, 0.0  ;;  %v572_v26 = vpop.permute.xlu0 %571  ;;  %1325 = vmatmul.msk.f32.vlgmr.msrb.gmra.mxu3 %vm146_vm1, %v543_v22  ;;  %v754_v22 = vld [vmem:[#allocation9 + $0x88] sm:$0xff] }
 0x181   :  { %v574_v28 = vmul.f32 %v572_v26, %v1668_v23 }
 0x182   :  { %v208_v29 = vadd.f32 %v207_v25, %v206_v27  ;;  %v1610_v25 = vmov 25  }
 0x183   :  { %578 = vrot.lane.b32.xlu0 %v574_v28, %s1602_s21 }
 0x184   :  { %209 = vst.msk [vmem:[#allocation2] sm:$0xff] %vm81_vm0, %v208_v29 }
 0x189   :  { %v615_v42 = vpop.permute.xlu2 %614 }
 0x18b   :  { %785 = vperm.xlu0 %1418, %v1655_v3   ;;  %v242_v37 = vld [vmem:[#allocation2] sm:$0xff] }
 0x18f   :  { %v435_v31 = vpop.permute.xlu1 %434  ;;  %v275_v41 = vpop.f32.mrf.mxu3 }
 0x190   :  { %1322 = vmatmul.msk.f32.vlgmr.msra.gmra.mxu0 %vm146_vm1, %v435_v31  ;;  %v279_v44 = vmax.f32 %v275_v41, 0.0  ;;  %v311_v50 = vpop.f32.mrf.mxu0 }
 0x191   :  { %v507_v33 = vpop.permute.xlu0 %506  ;;  %v315_v53 = vmax.f32 %v311_v50, 0.0  ;;  %v822_v62 = vpop.permute.xlu2 %821  ;;  %739 = vmatpush.msra.mxu0 %v720_v0  ;;  %v1612_v50 = vmov 29  }
 0x192   :  { %1324 = vmatmul.msk.f32.vlgmr.msrb.gmra.mxu2 %vm146_vm1, %v507_v33  ;;  %v824_v63 = vmul.f32 %v822_v62, %v1736_v49  ;;  %v1611_v33 = vmov 28  }
 0x193   :  { %1421 = vset.pattern.permute.xlu0 %v1604_v34 }
 0x194   :  { %857 = vperm.xlu0 %1421, %v1655_v3  }
 0x196   :  { %v239_v35 = vpop.f32.mrf.mxu2 }
 0x197   :  { %v243_v36 = vmax.f32 %v239_v35, 0.0 }
 0x198   :  { %v471_v38 = vpop.permute.xlu1 %470  ;;  %v347_v57 = vpop.f32.mrf.mxu1 }
 0x199   :  { %v244_v39 = vadd.f32 %v243_v36, %v242_v37  ;;  %1323 = vmatmul.msk.f32.vlgmr.msra.gmra.mxu1 %vm146_vm1, %v471_v38  ;;  %v351_v59 = vmax.f32 %v347_v57, 0.0 }
 0x19a   :  { %v716_v6 = vpop.permute.xlu2 %715  ;;  %775 = vmatpush.msra.mxu1 %v754_v22 }
 0x19b   :  { %245 = vst.msk [vmem:[#allocation2] sm:$0xff] %vm81_vm0, %v244_v39  ;;  %v718_v7 = vmul.f32 %v716_v6, %v1736_v49 }
 0x19c   :  { %1424 = vset.pattern.permute.xlu0 %v1605_v40 }
 0x19d   :  { %965 = vperm.xlu0 %1424, %v1655_v3  }
 0x1a0   :  { %v680_v43 = vpop.permute.xlu1 %679 }
 0x1a1   :  { %v682_v45 = vmul.f32 %v680_v43, %v1668_v23  ;;  %1327 = vmatmul.msk.f32.vlgmr.msrb.gmra.mxu1 %vm146_vm1, %v615_v42 }
 0x1a2   :  { %v278_v46 = vld [vmem:[#allocation2] sm:$0xff] }
 0x1a3   :  { %v280_v47 = vadd.f32 %v279_v44, %v278_v46  ;;  %686 = vrot.lane.b32.xlu1 %v682_v45, %s1568_s10 }
 0x1a5   :  { %281 = vst.msk [vmem:[#allocation2] sm:$0xff] %vm81_vm0, %v280_v47  ;;  %1428 = vset.pattern.permute.xlu0 %v1609_v18 }
 0x1a8   :  { %v419_v14 = vpop.f32.mrf.mxu3 }
 0x1a9   :  { %v750_v51 = vpop.permute.xlu1 %749  ;;  %v423_v16 = vmax.f32 %v419_v14, 0.0 }
 0x1aa   :  { %v752_v52 = vmul.f32 %v750_v51, %v1736_v49  ;;  %v790_v51 = vld [vmem:[#allocation9 + $0x90] sm:$0xff] }
 0x1ab   :  { %893 = vperm.xlu1 %1422, %v1655_v3   ;;  %811 = vmatpush.msrb.mxu2 %v790_v51 }
 0x1ac   :  { %v314_v54 = vld [vmem:[#allocation2] sm:$0xff]  ;;  %756 = vrot.lane.b32.xlu2 %v752_v52, %s1581_s11  ;;  %v826_v52 = vld [vmem:[#allocation9 + $0x98] sm:$0xff] }
 0x1ad   :  { %v316_v23 = vadd.f32 %v315_v53, %v314_v54  ;;  %847 = vmatpush.msrb.mxu3 %v826_v52  ;;  %v1613_v54 = vmov 30  }
 0x1af   :  { %317 = vst.msk [vmem:[#allocation2] sm:$0xff] %vm81_vm0, %v316_v23  ;;  %v1614_v23 = vmov 31  }
 0x1b1   :  { %v651_v56 = vpop.permute.xlu1 %650 }
 0x1b2   :  { %1328 = vmatmul.msk.f32.vlgmr.msra.gmra.mxu2 %vm146_vm1, %v651_v56  ;;  %v862_v56 = vld [vmem:[#allocation9 + $0xa0] sm:$0xff] }
 0x1b3   :  { %1423 = vset.pattern.permute.xlu1 %v1606_v58  ;;  %v934_v58 = vld [vmem:[#allocation9 + $0xb0] sm:$0xff] }
 0x1b4   :  { %929 = vperm.xlu1 %1423, %v1655_v3   ;;  %955 = vmatpush.msra.mxu2 %v934_v58  ;;  %v1186_v58 = vld [vmem:[#allocation9 + $0xe8] sm:$0xff] }
 0x1b6   :  { %v350_v60 = vld [vmem:[#allocation2] sm:$0xff] }
 0x1b7   :  { %v352_v61 = vadd.f32 %v351_v59, %v350_v60  ;;  %v970_v60 = vld [vmem:[#allocation9 + $0xb8] sm:$0xff] }
 0x1b9   :  { %353 = vst.msk [vmem:[#allocation2] sm:$0xff] %vm81_vm0, %v352_v61 }
 0x1bc   :  { %828 = vrot.lane.b32.xlu1 %v824_v63, %s1583_s13  ;;  %v898_v63 = vld [vmem:[#allocation9 + $0xa8] sm:$0xff] }
 0x1bd   :  { %1427 = vset.pattern.permute.xlu1 %v1608_v2  ;;  %919 = vmatpush.msrb.mxu1 %v898_v63 }
 0x1c0   :  { %v386_v11 = vld [vmem:[#allocation2] sm:$0xff] }
 0x1f5   :  { %v579_v5 = vpop.permute.xlu0 %578 }
 0x1f6   :  { %1326 = vmatmul.msk.f32.vlgmr.msrb.gmra.mxu0 %vm146_vm1, %v579_v5 }
 0x1f7   :  { %883 = vmatpush.msrb.mxu0 %v862_v56 }
 0x1fc   :  { %v383_v8 = vpop.f32.mrf.mxu2 }
 0x1fd   :  { %v387_v9 = vmax.f32 %v383_v8, 0.0  ;;  %v786_v10 = vpop.permute.xlu0 %785 }
 0x1fe   :  { %v788_v12 = vmul.f32 %v786_v10, %v1736_v49  ;;  %1330 = vmatmul.msk.f32.vlgmr.msra.gmra.mxu0 %vm146_vm1, %v718_v7 }
 0x1ff   :  { %v388_v13 = vadd.f32 %v387_v9, %v386_v11 }
 0x200   :  { %792 = vrot.lane.b32.xlu2 %v788_v12, %s1580_s3 }
 0x201   :  { %389 = vst.msk [vmem:[#allocation2] sm:$0xff] %vm81_vm0, %v388_v13 }
 0x203   :  { %v563_v45 = vpop.f32.mrf.mxu3 }
 0x204   :  { %v567_v46 = vmax.f32 %v563_v45, 0.0 }
 0x206   :  { %v858_v15 = vpop.permute.xlu0 %857  ;;  %v757_v24 = vpop.permute.xlu2 %756 }
 0x207   :  { %v860_v17 = vmul.f32 %v858_v15, %v1736_v49  ;;  %1331 = vmatmul.msk.f32.vlgmr.msra.gmra.mxu1 %vm146_vm1, %v757_v24 }
 0x208   :  { %v422_v19 = vld [vmem:[#allocation2] sm:$0xff]  ;;  %1001 = vperm.xlu2 %1425, %v1655_v3  }
 0x209   :  { %v424_v20 = vadd.f32 %v423_v16, %v422_v19  ;;  %864 = vrot.lane.b32.xlu1 %v860_v17, %s1579_s2 }
 0x20b   :  { %425 = vst.msk [vmem:[#allocation2] sm:$0xff] %vm81_vm0, %v424_v20  ;;  %v1006_v20 = vld [vmem:[#allocation9 + $0xc0] sm:$0xff] }
 0x20c   :  { %1027 = vmatpush.msra.mxu0 %v1006_v20 }
 0x20d   :  { %v455_v21 = vpop.f32.mrf.mxu0 }
 0x20e   :  { %v459_v26 = vmax.f32 %v455_v21, 0.0 }
 0x20f   :  { %v966_v29 = vpop.permute.xlu0 %965 }
 0x210   :  { %1426 = vset.pattern.permute.xlu2 %v1610_v25  ;;  %v968_v31 = vmul.f32 %v966_v29, %v1736_v49 }
 0x211   :  { %1037 = vperm.xlu2 %1426, %v1655_v3   ;;  %1073 = vperm.xlu1 %1427, %v1655_v3  }
 0x212   :  { %v458_v27 = vld [vmem:[#allocation2] sm:$0xff] }
 0x213   :  { %v460_v28 = vadd.f32 %v459_v26, %v458_v27 }
 0x215   :  { %461 = vst.msk [vmem:[#allocation2] sm:$0xff] %vm81_vm0, %v460_v28  ;;  %v687_v30 = vpop.permute.xlu1 %686  ;;  %v527_v39 = vpop.f32.mrf.mxu2 }
 0x216   :  { %1329 = vmatmul.msk.f32.vlgmr.msra.gmra.mxu3 %vm146_vm1, %v687_v30  ;;  %v491_v32 = vpop.f32.mrf.mxu1  ;;  %v531_v40 = vmax.f32 %v527_v39, 0.0  ;;  %v1078_v39 = vld [vmem:[#allocation9 + $0xd0] sm:$0xff] }
 0x217   :  { %v495_v34 = vmax.f32 %v491_v32, 0.0  ;;  %991 = vmatpush.msra.mxu3 %v970_v60 }
 0x219   :  { %972 = vrot.lane.b32.xlu1 %v968_v31, %s1586_s14  ;;  %1429 = vset.pattern.permute.xlu2 %v1611_v33 }
 0x21a   :  { %1431 = vset.pattern.permute.xlu1 %v1613_v54 }
 0x21c   :  { %v494_v35 = vld [vmem:[#allocation2] sm:$0xff] }
 0x21d   :  { %v496_v36 = vadd.f32 %v495_v34, %v494_v35  ;;  %v894_v37 = vpop.permute.xlu1 %893 }
 0x21e   :  { %v896_v38 = vmul.f32 %v894_v37, %v1736_v49  ;;  %v635_v5 = vpop.f32.mrf.mxu1 }
 0x21f   :  { %497 = vst.msk [vmem:[#allocation2] sm:$0xff] %vm81_vm0, %v496_v36  ;;  %v639_v7 = vmax.f32 %v635_v5, 0.0 }
 0x220   :  { %900 = vrot.lane.b32.xlu0 %v896_v38, %s1582_s12  ;;  %v1042_v38 = vld [vmem:[#allocation9 + $0xc8] sm:$0xff] }
 0x221   :  { %1063 = vmatpush.msra.mxu1 %v1042_v38 }
 0x226   :  { %v530_v41 = vld [vmem:[#allocation2] sm:$0xff]  ;;  %v930_v42 = vpop.permute.xlu1 %929 }
 0x227   :  { %v532_v43 = vadd.f32 %v531_v40, %v530_v41  ;;  %v932_v44 = vmul.f32 %v930_v42, %v1736_v49  ;;  %v1150_v40 = vld [vmem:[#allocation9 + $0xe0] sm:$0xff] }
 0x228   :  { %1109 = vperm.xlu0 %1428, %v1655_v3  }
 0x229   :  { %533 = vst.msk [vmem:[#allocation2] sm:$0xff] %vm81_vm0, %v532_v43  ;;  %936 = vrot.lane.b32.xlu2 %v932_v44, %s1591_s15 }
 0x22e   :  { %v829_v53 = vpop.permute.xlu1 %828 }
 0x22f   :  { %1333 = vmatmul.msk.f32.vlgmr.msrb.gmra.mxu3 %vm146_vm1, %v829_v53 }
 0x230   :  { %v566_v47 = vld [vmem:[#allocation2] sm:$0xff]  ;;  %1432 = vset.pattern.permute.xlu0 %v1614_v23 }
 0x231   :  { %v568_v48 = vadd.f32 %v567_v46, %v566_v47  ;;  %1145 = vperm.xlu2 %1429, %v1655_v3  }
 0x233   :  { %569 = vst.msk [vmem:[#allocation2] sm:$0xff] %vm81_vm0, %v568_v48 }
 0x235   :  { %v671_v13 = vpop.f32.mrf.mxu2 }
 0x239   :  { %1430 = vset.pattern.permute.xlu2 %v1612_v50 }
 0x23a   :  { %1181 = vperm.xlu2 %1430, %v1655_v3   ;;  %v602_v2 = vld [vmem:[#allocation2] sm:$0xff] }
 0x25a   :  { %v793_v55 = vpop.permute.xlu2 %792 }
 0x25b   :  { %1332 = vmatmul.msk.f32.vlgmr.msrb.gmra.mxu2 %vm146_vm1, %v793_v55 }
 0x25c   :  { %1099 = vmatpush.msrb.mxu2 %v1078_v39 }
 0x262   :  { %v1002_v57 = vpop.permute.xlu2 %1001 }
 0x263   :  { %v1004_v59 = vmul.f32 %v1002_v57, %v1736_v49  ;;  %v1114_v57 = vld [vmem:[#allocation9 + $0xd8] sm:$0xff] }
 0x264   :  { %1135 = vmatpush.msrb.mxu3 %v1114_v57 }
 0x265   :  { %1008 = vrot.lane.b32.xlu1 %v1004_v59, %s1593_s16 }
 0x26b   :  { %v1038_v61 = vpop.permute.xlu2 %1037 }
 0x26c   :  { %v1040_v62 = vmul.f32 %v1038_v61, %v1736_v49 }
 0x26d   :  { %1217 = vperm.xlu1 %1431, %v1655_v3  }
 0x26e   :  { %1044 = vrot.lane.b32.xlu0 %v1040_v62, %s1596_s19 }
 0x273   :  { %v599_v0 = vpop.f32.mrf.mxu0 }
 0x274   :  { %v603_v1 = vmax.f32 %v599_v0, 0.0 }
 0x276   :  { %v604_v4 = vadd.f32 %v603_v1, %v602_v2  ;;  %1253 = vperm.xlu0 %1432, %v1655_v3   ;;  %v675_v3 = vmax.f32 %v671_v13, 0.0 }
 0x278   :  { %605 = vst.msk [vmem:[#allocation2] sm:$0xff] %vm81_vm0, %v604_v4 }
 0x27b   :  { %v865_v6 = vpop.permute.xlu1 %864  ;;  %v741_v29 = vpop.f32.mrf.mxu0 }
 0x27c   :  { %1334 = vmatmul.msk.f32.vlgmr.msrb.gmra.mxu0 %vm146_vm1, %v865_v6  ;;  %v745_v31 = vmax.f32 %v741_v29, 0.0 }
 0x27d   :  { %1171 = vmatpush.msrb.mxu0 %v1150_v40 }
 0x27f   :  { %v638_v8 = vld [vmem:[#allocation2] sm:$0xff] }
 0x280   :  { %v640_v9 = vadd.f32 %v639_v7, %v638_v8  ;;  %v1222_v7 = vld [vmem:[#allocation9 + $0xf0] sm:$0xff] }
 0x282   :  { %641 = vst.msk [vmem:[#allocation2] sm:$0xff] %vm81_vm0, %v640_v9 }
 0x283   :  { %v1074_v10 = vpop.permute.xlu1 %1073  ;;  %v937_v11 = vpop.permute.xlu2 %936 }
 0x284   :  { %v1076_v12 = vmul.f32 %v1074_v10, %v1736_v49  ;;  %1336 = vmatmul.msk.f32.vlgmr.msra.gmra.mxu2 %vm146_vm1, %v937_v11  ;;  %v777_v34 = vpop.f32.mrf.mxu1 }
 0x285   :  { %v781_v35 = vmax.f32 %v777_v34, 0.0  ;;  %1243 = vmatpush.msra.mxu2 %v1222_v7 }
 0x286   :  { %1080 = vrot.lane.b32.xlu2 %v1076_v12, %s1594_s17 }
 0x289   :  { %v674_v14 = vld [vmem:[#allocation2] sm:$0xff] }
 0x28a   :  { %v676_v15 = vadd.f32 %v675_v3, %v674_v14  ;;  %v1258_v3 = vld [vmem:[#allocation9 + $0xf8] sm:$0xff] }
 0x28b   :  { %v973_v16 = vpop.permute.xlu1 %972  ;;  %v1146_v17 = vpop.permute.xlu2 %1145 }
 0x28c   :  { %v1148_v18 = vmul.f32 %v1146_v17, %v1736_v49  ;;  %1337 = vmatmul.msk.f32.vlgmr.msra.gmra.mxu3 %vm146_vm1, %v973_v16  ;;  %677 = vst.msk [vmem:[#allocation2] sm:$0xff] %vm81_vm0, %v676_v15 }
 0x28d   :  { %1279 = vmatpush.msra.mxu3 %v1258_v3 }
 0x28e   :  { %1152 = vrot.lane.b32.xlu2 %v1148_v18, %s1602_s21 }
 0x292   :  { %v901_v19 = vpop.permute.xlu0 %900 }
 0x293   :  { %1335 = vmatmul.msk.f32.vlgmr.msrb.gmra.mxu1 %vm146_vm1, %v901_v19  ;;  %v710_v25 = vld [vmem:[#allocation2] sm:$0xff] }
 0x294   :  { %v1182_v28 = vpop.permute.xlu2 %1181  ;;  %1207 = vmatpush.msrb.mxu1 %v1186_v58 }
 0x295   :  { %v1184_v30 = vmul.f32 %v1182_v28, %v1736_v49 }
 0x299   :  { %v707_v21 = vpop.f32.mrf.mxu3 }
 0x29a   :  { %v711_v22 = vmax.f32 %v707_v21, 0.0  ;;  %v1110_v24 = vpop.permute.xlu0 %1109 }
 0x29b   :  { %v1112_v26 = vmul.f32 %v1110_v24, %v1736_v49 }
 0x29c   :  { %v712_v27 = vadd.f32 %v711_v22, %v710_v25 }
 0x29d   :  { %1116 = vrot.lane.b32.xlu1 %v1112_v26, %s1595_s18 }
 0x29e   :  { %713 = vst.msk [vmem:[#allocation2] sm:$0xff] %vm81_vm0, %v712_v27 }
 0x2a5   :  { %1188 = vrot.lane.b32.xlu1 %v1184_v30, %s1597_s20  ;;  %v744_v32 = vld [vmem:[#allocation2] sm:$0xff] }
 0x2a6   :  { %v746_v33 = vadd.f32 %v745_v31, %v744_v32 }
 0x2a8   :  { %747 = vst.msk [vmem:[#allocation2] sm:$0xff] %vm81_vm0, %v746_v33 }
 0x2af   :  { %v780_v36 = vld [vmem:[#allocation2] sm:$0xff] }
 0x2b0   :  { %v782_v37 = vadd.f32 %v781_v35, %v780_v36 }
 0x2b2   :  { %783 = vst.msk [vmem:[#allocation2] sm:$0xff] %vm81_vm0, %v782_v37  ;;  %v849_v51 = vpop.f32.mrf.mxu3 }
 0x2b3   :  { %v853_v52 = vmax.f32 %v849_v51, 0.0 }
 0x2b9   :  { %v816_v45 = vld [vmem:[#allocation2] sm:$0xff] }
 0x2d7   :  { %v1009_v41 = vpop.permute.xlu1 %1008 }
 0x2d8   :  { %1338 = vmatmul.msk.f32.vlgmr.msra.gmra.mxu0 %vm146_vm1, %v1009_v41 }
 0x2de   :  { %v813_v42 = vpop.f32.mrf.mxu2 }
 0x2df   :  { %v817_v43 = vmax.f32 %v813_v42, 0.0  ;;  %v1218_v44 = vpop.permute.xlu1 %1217 }
 0x2e0   :  { %v1220_v46 = vmul.f32 %v1218_v44, %v1736_v49  ;;  %v1045_v47 = vpop.permute.xlu0 %1044  ;;  %v1081_v48 = vpop.permute.xlu2 %1080 }
 0x2e1   :  { %v818_v50 = vadd.f32 %v817_v43, %v816_v45  ;;  %1339 = vmatmul.msk.f32.vlgmr.msra.gmra.mxu1 %vm146_vm1, %v1045_v47  ;;  %1340 = vmatmul.msk.f32.vlgmr.msrb.gmra.mxu2 %vm146_vm1, %v1081_v48 }
 0x2e2   :  { %1224 = vrot.lane.b32.xlu2 %v1220_v46, %s1563_s24 }
 0x2e3   :  { %819 = vst.msk [vmem:[#allocation2] sm:$0xff] %vm81_vm0, %v818_v50 }
 0x2e8   :  { %v1254_v53 = vpop.permute.xlu0 %1253  ;;  %v1153_v54 = vpop.permute.xlu2 %1152 }
 0x2e9   :  { %v1256_v23 = vmul.f32 %v1254_v53, %v1736_v49  ;;  %1342 = vmatmul.msk.f32.vlgmr.msrb.gmra.mxu0 %vm146_vm1, %v1153_v54 }
 0x2ea   :  { %v852_v55 = vld [vmem:[#allocation2] sm:$0xff] }
 0x2eb   :  { %v854_v56 = vadd.f32 %v853_v52, %v852_v55  ;;  %1260 = vrot.lane.b32.xlu0 %v1256_v23, %s1568_s10 }
 0x2ed   :  { %855 = vst.msk [vmem:[#allocation2] sm:$0xff] %vm81_vm0, %v854_v56 }
 0x2f4   :  { %v888_v61 = vld [vmem:[#allocation2] sm:$0xff] }
 0x2f9   :  { %v885_v59 = vpop.f32.mrf.mxu0 }
 0x2fa   :  { %v889_v60 = vmax.f32 %v885_v59, 0.0 }
 0x2fc   :  { %v890_v62 = vadd.f32 %v889_v60, %v888_v61 }
 0x2fe   :  { %891 = vst.msk [vmem:[#allocation2] sm:$0xff] %vm81_vm0, %v890_v62 }
 0x305   :  { %v924_v1 = vld [vmem:[#allocation2] sm:$0xff] }
 0x307   :  { %v957_v5 = vpop.f32.mrf.mxu2 }
 0x308   :  { %v961_v6 = vmax.f32 %v957_v5, 0.0 }
 0x30f   :  { %v1117_v63 = vpop.permute.xlu1 %1116  ;;  %v993_v10 = vpop.f32.mrf.mxu3 }
 0x310   :  { %v921_v49 = vpop.f32.mrf.mxu1  ;;  %1341 = vmatmul.msk.f32.vlgmr.msrb.gmra.mxu3 %vm146_vm1, %v1117_v63  ;;  %v997_v11 = vmax.f32 %v993_v10, 0.0 }
 0x311   :  { %v925_v0 = vmax.f32 %v921_v49, 0.0 }
 0x313   :  { %v926_v2 = vadd.f32 %v925_v0, %v924_v1 }
 0x315   :  { %927 = vst.msk [vmem:[#allocation2] sm:$0xff] %vm81_vm0, %v926_v2 }
 0x317   :  { %v1189_v4 = vpop.permute.xlu1 %1188 }
 0x318   :  { %1343 = vmatmul.msk.f32.vlgmr.msrb.gmra.mxu1 %vm146_vm1, %v1189_v4 }
 0x31c   :  { %v960_v8 = vld [vmem:[#allocation2] sm:$0xff] }
 0x31d   :  { %v962_v9 = vadd.f32 %v961_v6, %v960_v8 }
 0x31f   :  { %963 = vst.msk [vmem:[#allocation2] sm:$0xff] %vm81_vm0, %v962_v9 }
 0x326   :  { %v996_v12 = vld [vmem:[#allocation2] sm:$0xff] }
 0x327   :  { %v998_v13 = vadd.f32 %v997_v11, %v996_v12 }
 0x329   :  { %999 = vst.msk [vmem:[#allocation2] sm:$0xff] %vm81_vm0, %v998_v13 }
 0x330   :  { %v1032_v17 = vld [vmem:[#allocation2] sm:$0xff] }
 0x33c   :  { %v1225_v14 = vpop.permute.xlu2 %1224 }
 0x33d   :  { %1344 = vmatmul.msk.f32.vlgmr.msra.gmra.mxu2 %vm146_vm1, %v1225_v14 }
 0x355   :  { %v1029_v15 = vpop.f32.mrf.mxu0 }
 0x356   :  { %v1033_v16 = vmax.f32 %v1029_v15, 0.0 }
 0x358   :  { %v1034_v18 = vadd.f32 %v1033_v16, %v1032_v17 }
 0x35a   :  { %1035 = vst.msk [vmem:[#allocation2] sm:$0xff] %vm81_vm0, %v1034_v18 }
 0x35d   :  { %v1261_v19 = vpop.permute.xlu0 %1260 }
 0x35e   :  { %v1065_v20 = vpop.f32.mrf.mxu1  ;;  %1345 = vmatmul.msk.f32.vlgmr.msra.gmra.mxu3 %vm146_vm1, %v1261_v19 }
 0x35f   :  { %v1069_v21 = vmax.f32 %v1065_v20, 0.0 }
 0x361   :  { %v1068_v22 = vld [vmem:[#allocation2] sm:$0xff] }
 0x362   :  { %v1070_v24 = vadd.f32 %v1069_v21, %v1068_v22 }
 0x364   :  { %1071 = vst.msk [vmem:[#allocation2] sm:$0xff] %vm81_vm0, %v1070_v24  ;;  %v1101_v25 = vpop.f32.mrf.mxu2 }
 0x365   :  { %v1105_v26 = vmax.f32 %v1101_v25, 0.0 }
 0x366   :  { %v1173_v33 = vpop.f32.mrf.mxu0 }
 0x367   :  { %v1177_v34 = vmax.f32 %v1173_v33, 0.0 }
 0x36b   :  { %v1104_v27 = vld [vmem:[#allocation2] sm:$0xff] }
 0x36c   :  { %v1106_v28 = vadd.f32 %v1105_v26, %v1104_v27 }
 0x36e   :  { %1107 = vst.msk [vmem:[#allocation2] sm:$0xff] %vm81_vm0, %v1106_v28 }
 0x375   :  { %v1140_v31 = vld [vmem:[#allocation2] sm:$0xff] }
 0x393   :  { %v1137_v29 = vpop.f32.mrf.mxu3 }
 0x394   :  { %v1141_v30 = vmax.f32 %v1137_v29, 0.0 }
 0x395   :  { %v1209_v37 = vpop.f32.mrf.mxu1 }
 0x396   :  { %v1142_v32 = vadd.f32 %v1141_v30, %v1140_v31  ;;  %v1213_v38 = vmax.f32 %v1209_v37, 0.0 }
 0x398   :  { %1143 = vst.msk [vmem:[#allocation2] sm:$0xff] %vm81_vm0, %v1142_v32 }
 0x39f   :  { %v1176_v35 = vld [vmem:[#allocation2] sm:$0xff] }
 0x3a0   :  { %v1178_v36 = vadd.f32 %v1177_v34, %v1176_v35 }
 0x3a2   :  { %1179 = vst.msk [vmem:[#allocation2] sm:$0xff] %vm81_vm0, %v1178_v36 }
 0x3a9   :  { %v1212_v39 = vld [vmem:[#allocation2] sm:$0xff] }
 0x3aa   :  { %v1214_v40 = vadd.f32 %v1213_v38, %v1212_v39 }
 0x3ac   :  { %1215 = vst.msk [vmem:[#allocation2] sm:$0xff] %vm81_vm0, %v1214_v40 }
 0x3b3   :  { %v1248_v43 = vld [vmem:[#allocation2] sm:$0xff] }
 0x3c0   :  { %v1245_v41 = vpop.f32.mrf.mxu2 }
 0x3c1   :  { %v1249_v42 = vmax.f32 %v1245_v41, 0.0 }
 0x3c3   :  { %v1250_v44 = vadd.f32 %v1249_v42, %v1248_v43 }
 0x3c5   :  { %1251 = vst.msk [vmem:[#allocation2] sm:$0xff] %vm81_vm0, %v1250_v44 }
 0x3cc   :  { %v1284_v47 = vld [vmem:[#allocation2] sm:$0xff] }
 0x3e1   :  { %v1281_v45 = vpop.f32.mrf.mxu3 }
 0x3e2   :  { %v1285_v46 = vmax.f32 %v1281_v45, 0.0 }
 0x3e4   :  { %v1286_v48 = vadd.f32 %v1285_v46, %v1284_v47 }
 0x3e6   :  { %1287 = vst.msk [vmem:[#allocation2] sm:$0xff] %vm81_vm0, %v1286_v48 }
 0x3ed   :  { %v1291_v50 = vld [vmem:[#allocation2] sm:$0xff] }
 0x3ee   :  { %1292 = vst.msk [vmem:[#allocation11] sm:$0xff] %vm81_vm0, %v1291_v50 }
 0x3ef   :  { %1303 = dma.vmem_to_hbm [thread:$0]  %s1299_s23, 128, %s1301_s26, [#allocation5]  }
 0x3f0   :  { %1559 = dma.done.wait [#allocation5], 128  }
 0x3f1   :  { %1560 = vsyncadd [#allocation5], 4294967168 }
 0x3f2   :  { %1308 = vsyncpa [#allocation4], 1 }
 0x3f3   :  { %1309 = vsyncpa [#allocation7], 1 }
 0x3f4   :  { %1310 = vsyncpa [#allocation10], 1 }
 0x3f5   :  { %1311 = vsyncpa [#allocation5], 1 }

</bundles_post_ra>
